<compile_context>
chip_gen: v7x
topology: tpu7x:2x2x1
jax: 0.10.0
libtpu: 0.0.40
codegen_flags: <defaults>
</compile_context>

<pallas_src>
import functools
import inspect
import numpy as np

import jax
import jax.numpy as jnp
from jax import lax
from jax.experimental import pallas as pl
from jax.experimental.pallas import tpu as pltpu

_LN_EPS = 1e-5


def _cdiv(a, b):
    return -(-a // b)


def _rup(a, b):
    return _cdiv(a, b) * b


# ---------------------------------------------------------------------------
# Fused gather + projection + LayerNorm + cls/pad-fill kernel
# ---------------------------------------------------------------------------
def _embed_kernel(src_ref, hi_ref,             # scalar prefetch (SMEM, int32)
                  consts_ref, w_ref, fv_hbm,   # inputs
                  o_ref,                       # output block (tile_m, D)
                  x_vmem, sem,                 # scratch: token tile + DMA sems
                  *, chunks, num_cls):
    # consts_ref rows: 0=proj bias, 1=ln gamma, 2=ln beta, 3=LayerNorm(cls)
    b = pl.program_id(0)
    j = pl.program_id(1)
    t = b * pl.num_programs(1) + j
    src = src_ref[t]        # first source row (padded token coords) of tile
    hi = hi_ref[t]          # one past the last token row, tile-local

    bias = consts_ref[0:1, :]
    gamma = consts_ref[1:2, :]
    beta = consts_ref[2:3, :]
    cls_ln = consts_ref[3:4, :]
    D = consts_ref.shape[-1]

    # Issue every needed chunk DMA up front so later chunks' HBM loads overlap
    # the earlier chunks' matmul / LayerNorm.  Chunks past the token range
    # (pure padding) issue no DMA at all (saves real HBM bandwidth).
    for c, (r0, sz) in enumerate(chunks):
        @pl.when(r0 < hi)
        def _(c=c, r0=r0, sz=sz):
            pltpu.make_async_copy(
                fv_hbm.at[pl.ds(src + r0, sz)],
                x_vmem.at[pl.ds(r0, sz)],
                sem.at[c]).start()

    tok_lo = jnp.where(j == 0, num_cls, 0)     # cls rows live in tile j == 0

    for c, (r0, sz) in enumerate(chunks):
        rows = lax.broadcasted_iota(jnp.int32, (sz, 1), 0) + r0
        beta_fill = jnp.broadcast_to(beta, (sz, D))
        has_tok = r0 < hi

        @pl.when(has_tok)
        def _(c=c, r0=r0, sz=sz, rows=rows, beta_fill=beta_fill):
            pltpu.make_async_copy(
                fv_hbm.at[pl.ds(src + r0, sz)],
                x_vmem.at[pl.ds(r0, sz)],
                sem.at[c]).wait()
            x = x_vmem[pl.ds(r0, sz), :]               # already in MXU dtype
            y = jnp.dot(x, w_ref[...],
                        preferred_element_type=jnp.float32) + bias
            # one-pass LayerNorm over D (biased variance, eps=1e-5, torch-style)
            mean = jnp.mean(y, axis=-1, keepdims=True)
            msq = jnp.mean(y * y, axis=-1, keepdims=True)
            inv = lax.rsqrt(msq - mean * mean + _LN_EPS)
            ln = (y - mean) * inv * gamma + beta
            is_tok = (rows >= tok_lo) & (rows < hi)
            out = jnp.where(is_tok, ln, beta_fill)     # pad rows: LN(0) = beta
            if c == 0:
                out = jnp.where((rows < num_cls) & (j == 0), cls_ln, out)
            o_ref[pl.ds(r0, sz), :] = out.astype(o_ref.dtype)

        @pl.when(jnp.logical_not(has_tok))
        def _(c=c, r0=r0, sz=sz, rows=rows, beta_fill=beta_fill):
            out = beta_fill                            # pure padding chunk
            if c == 0:
                out = jnp.where((rows < num_cls) & (j == 0), cls_ln, out)
            o_ref[pl.ds(r0, sz), :] = out.astype(o_ref.dtype)


# ---------------------------------------------------------------------------
# Tile / chunk / VMEM planning
# ---------------------------------------------------------------------------
def _detect_vmem_capacity():
    try:
        info = pltpu.get_tpu_info()
        cap = getattr(info, "vmem_capacity_bytes", None)
        if cap:
            return int(cap)
    except Exception:
        pass
    return 64 * 1024 * 1024            # conservative (v7x per-core figure)


def _vmem_estimate(tile_m, T, D, x_bytes, w_bytes, out_bytes):
    # weight conservatively counted double-buffered in case Buffered(1) is not
    # honored; + packed consts, gathered token tile, double-buffered out block.
    return (2 * w_bytes + 2 * 8 * D * 4 + tile_m * T * x_bytes
            + 2 * tile_m * D * out_bytes + (2 << 20))


def _chunk_plan(tile_m):
    """Static (start, size) chunks of a row tile: the per-chunk DMAs overlap
    the previous chunk's matmul/LN and let pad-only chunks skip their DMA."""
    if tile_m < 16:
        return ((0, tile_m),)
    n = 4 if tile_m >= 64 else 2
    base = _rup(_cdiv(tile_m, n), 8)
    plan, r = [], 0
    while r < tile_m:
        sz = min(base, tile_m - r)
        plan.append((r, sz))
        r += sz
    return tuple(plan)


def _choose_row_tile(B, maxdim, T, D, x_bytes, w_bytes, out_bytes, vmem_cap):
    """Biggest row tile that fits the VMEM budget (amortizes the ~0.35us
    per-grid-step overhead); keeps the total step count even for v7x
    megacore balance."""
    target = 1024 if vmem_cap >= (100 << 20) else 512
    budget = min(int(vmem_cap * 0.55), 44 << 20)

    def est(tm):
        return _vmem_estimate(tm, T, D, x_bytes, w_bytes, out_bytes)

    if maxdim <= 8:
        return maxdim                      # block == full dim, never ragged
    if (maxdim <= target and est(_rup(maxdim, 8)) <= budget
            and (B % 2 == 0 or B == 1 or maxdim < 16)):
        return maxdim                      # one exact tile per batch

    k = max(1, _cdiv(maxdim, target))
    tm = _rup(_cdiv(maxdim, k), 8)
    while est(tm) > budget and tm > 64:
        k += 1
        tm = _rup(_cdiv(maxdim, k), 8)

    # v7x has two TensorCores: keep B * n_tiles even when it is cheap to do.
    if (B * _cdiv(maxdim, tm)) % 2 == 1:
        tm2 = _rup(_cdiv(maxdim, _cdiv(maxdim, tm) + 1), 8)
        if tm2 >= 8 and (B * _cdiv(maxdim, tm2)) % 2 == 0 and est(tm2) <= budget:
            tm = tm2
    return tm


# ---------------------------------------------------------------------------
# pallas_call builder
# ---------------------------------------------------------------------------
def fused_embed_pallas(fv_pad, src_idx, tok_hi, w_t, consts, *, B, maxdim,
                       tile_m, chunks, num_cls, out_dtype, vmem_limit_bytes,
                       single_buffer_resident=True):
    T = fv_pad.shape[1]
    D = w_t.shape[1]
    n_tiles = _cdiv(maxdim, tile_m)

    def _resident_spec(shape):
        kwargs = {}
        if single_buffer_resident:
            try:
                if (hasattr(pl, "Buffered")
                        and "pipeline_mode" in inspect.signature(pl.BlockSpec).parameters):
                    kwargs["pipeline_mode"] = pl.Buffered(1)   # never re-fetched
            except Exception:
                pass
        return pl.BlockSpec(shape, lambda b, j, *_: (0, 0), **kwargs)

    grid_spec = pltpu.PrefetchScalarGridSpec(
        num_scalar_prefetch=2,
        grid=(B, n_tiles),
        in_specs=[
            _resident_spec((8, D)),                 # packed constants
            _resident_spec((T, D)),                 # projection weight (resident)
            pl.BlockSpec(memory_space=pl.ANY),      # raw tokens stay in HBM
        ],
        out_specs=pl.BlockSpec((None, tile_m, D), lambda b, j, *_: (b, j, 0)),
        scratch_shapes=[
            pltpu.VMEM((tile_m, T), fv_pad.dtype),  # gathered token tile
            pltpu.SemaphoreType.DMA((len(chunks),)),
        ])

    kernel = functools.partial(_embed_kernel, chunks=chunks, num_cls=num_cls)
    return pl.pallas_call(
        kernel,
        out_shape=jax.ShapeDtypeStruct((B, maxdim, D), out_dtype),
        grid_spec=grid_spec,
        compiler_params=pltpu.CompilerParams(
            dimension_semantics=("parallel", "parallel"),
            vmem_limit_bytes=int(vmem_limit_bytes)),
    )(src_idx, tok_hi, consts, w_t, fv_pad)


# ---------------------------------------------------------------------------
# DPXEmbedder (forward only)
# ---------------------------------------------------------------------------
def init_dpx_embedder_params(key, embed_dim, patch_size, channels=3,
                             compute_grad=False, num_cls_tokens=1,
                             pos_patch_size=None, weight_dtype=jnp.bfloat16):
    pos_patch_size = patch_size if pos_patch_size is None else pos_patch_size
    token_dim = (channels + int(compute_grad)) * patch_size ** 2 + pos_patch_size ** 2
    k_w, k_b, k_c = jax.random.split(key, 3)
    bound = 1.0 / np.sqrt(token_dim)
    w = jax.random.uniform(k_w, (embed_dim, token_dim), jnp.float32, -bound, bound)
    params = {
        # pre-transposed once at init; stored in the MXU dtype (bf16 default)
        "proj_weight_t": jnp.asarray(w.T).astype(weight_dtype),     # (T, D)
        "proj_bias": jax.random.uniform(k_b, (1, embed_dim), jnp.float32,
                                        -bound, bound),             # (1, D)
        "cls_token": 1e-4 * jax.random.normal(k_c, (num_cls_tokens, embed_dim),
                                              jnp.float32),         # (nC, D)
        "ln_gamma": jnp.ones((1, embed_dim), jnp.float32),
        "ln_beta": jnp.zeros((1, embed_dim), jnp.float32),
    }
    cfg = dict(embed_dim=embed_dim, patch_size=patch_size, channels=channels,
               compute_grad=compute_grad, num_cls_tokens=num_cls_tokens,
               pos_patch_size=pos_patch_size, token_dim=token_dim)
    return params, cfg


def compute_embedder_meta(seg, byx0, B):
    """Host bookkeeping (data-dependent output shape => host sync, exactly as
    the torch unique()/bincount() path).  Callers that reuse the same
    seg/byx0 can pass the result back via `meta=` to amortize it."""
    seg_np = np.asarray(seg).reshape(-1).astype(np.int64)
    byx_np = np.asarray(byx0).reshape(-1).astype(np.int64)
    ids = np.unique(seg_np * B + byx_np)
    bc = np.bincount(ids % B, minlength=B).astype(np.int64)
    cs = np.cumsum(bc)
    st = cs - bc
    return dict(bc=bc, st=st, cs=cs, maxdim=int(bc.max()) + 1,
                num_tokens=int(bc.sum()))


def dpx_embedder_forward(params, cfg, seg, byx0, fV_raw, *, meta=None,
                         tile_m=None, out_dtype=jnp.float32):
    """Mirrors DPXEmbedder.forward.

    seg:    (B, H, W) int32 segment map
    byx0:   (B*H*W,)  int32 per-pixel batch index (res.byx[0])
    fV_raw: (N, T)    f32   per-segment raw token features (res.fV)
    Returns (fV (B, maxdim, D), seg, amask (B, maxdim + nC - 1) bool).
    """
    B = seg.shape[0]
    T = cfg["token_dim"]
    nC = cfg["num_cls_tokens"]
    D = cfg["embed_dim"]
    # forward() reserves maxdim = bc.max()+1 rows per batch -> room for 1 cls.
    assert nC == 1, "DPXEmbedder.forward only supports num_cls_tokens == 1"

    if meta is None:
        meta = compute_embedder_meta(seg, byx0, B)
    bc, st, maxdim, N = meta["bc"], meta["st"], meta["maxdim"], meta["num_tokens"]

    w_t = params["proj_weight_t"]                   # (T, D), bf16 by default
    mm_dtype = w_t.dtype
    fV_flat = fV_raw.reshape(-1, T)
    assert fV_flat.shape[0] == N

    vmem_cap = _detect_vmem_capacity()
    x_bytes = jnp.dtype(mm_dtype).itemsize
    out_bytes = jnp.dtype(out_dtype).itemsize
    w_bytes = T * D * x_bytes
    if tile_m is None:
        tile_m = _choose_row_tile(B, maxdim, T, D, x_bytes, w_bytes,
                                  out_bytes, vmem_cap)
    assert tile_m == maxdim or (tile_m % 8 == 0 and tile_m >= 8)
    chunks = _chunk_plan(tile_m)
    n_tiles = _cdiv(maxdim, tile_m)

    # Per-tile gather metadata (scalar-prefetched into SMEM).
    j_idx = np.arange(n_tiles, dtype=np.int64)
    src_idx = (st[:, None] + j_idx[None, :] * tile_m).astype(np.int32).reshape(-1)
    tok_hi = np.clip(nC + bc[:, None] - j_idx[None, :] * tile_m, 0, tile_m)
    tok_hi = tok_hi.astype(np.int32).reshape(-1)

    # Only pre-kernel copy of token data: front-pad by nC rows (so the cls
    # slot of every batch's first tile maps to a readable row) and tail-pad
    # by tile_m rows (so the fixed-size chunk DMAs never run off the buffer).
    # Done in the MXU dtype, so it also halves kernel-side input HBM bytes.
    fv_pad = jnp.concatenate([
        jnp.zeros((nC, T), mm_dtype),
        fV_flat.astype(mm_dtype),
        jnp.zeros((tile_m, T), mm_dtype)], axis=0)

    # LN(cls_token): tiny (nC, D), computed once outside the kernel (f32).
    cls = params["cls_token"].astype(jnp.float32)
    mu = jnp.mean(cls, axis=-1, keepdims=True)
    var = jnp.mean((cls - mu) ** 2, axis=-1, keepdims=True)
    cls_ln = (cls - mu) * lax.rsqrt(var + _LN_EPS) * params["ln_gamma"] \
        + params["ln_beta"]

    # Packed (8, D) constants block: bias, gamma, beta, LN(cls), zero pad.
    consts = jnp.concatenate([
        params["proj_bias"], params["ln_gamma"], params["ln_beta"], cls_ln,
        jnp.zeros((8 - 3 - nC, D), jnp.float32)], axis=0)

    est = _vmem_estimate(tile_m, T, D, x_bytes, w_bytes, out_bytes)
    vmem_limit = int(min(0.9 * vmem_cap, max(32 << 20, est + (16 << 20))))

    kwargs = dict(B=B, maxdim=maxdim, tile_m=tile_m, chunks=chunks,
                  num_cls=nC, out_dtype=out_dtype, vmem_limit_bytes=vmem_limit)
    try:
        fV_out = fused_embed_pallas(fv_pad, jnp.asarray(src_idx),
                                    jnp.asarray(tok_hi), w_t, consts,
                                    single_buffer_resident=True, **kwargs)
    except Exception:
        # Fallback if this JAX rejects pipeline_mode=pl.Buffered(1).
        fV_out = fused_embed_pallas(fv_pad, jnp.asarray(src_idx),
                                    jnp.asarray(tok_hi), w_t, consts,
                                    single_buffer_resident=False, **kwargs)

    # amask: exactly the PyTorch construction, vectorized (tiny, host-side).
    width = maxdim + nC - 1
    amask = jnp.asarray(np.arange(width)[None, :] < (np.asarray(bc) + nC)[:, None])

    # TODO(synk): cache `meta` / src_idx / tok_hi per (seg, byx0) upstream when
    # the segmentation is reused across forwards (host sync dominates small R).
    return fV_out, seg, amask


# ---------------------------------------------------------------------------
# Pure-JAX reference for correctness checks
# ---------------------------------------------------------------------------
def _reference_forward(params, cfg, seg, byx0, fV_raw):
    B = seg.shape[0]
    T, nC, D = cfg["token_dim"], cfg["num_cls_tokens"], cfg["embed_dim"]
    meta = compute_embedder_meta(seg, byx0, B)
    st, cs, maxdim = meta["st"], meta["cs"], meta["maxdim"]
    w = params["proj_weight_t"].astype(jnp.float32)
    fV_proj = fV_raw.reshape(-1, T) @ w + params["proj_bias"]
    blocks = []
    for b in range(B):
        start, stop = int(st[b]), int(cs[b])
        pad_rows = maxdim - (stop - start) - nC
        blocks.append(jnp.concatenate(
            [params["cls_token"].astype(jnp.float32), fV_proj[start:stop],
             jnp.zeros((pad_rows, D), jnp.float32)], 0))
    x = jnp.concatenate(blocks, 0)
    mean = jnp.mean(x, axis=-1, keepdims=True)
    var = jnp.mean((x - mean) ** 2, axis=-1, keepdims=True)
    y = (x - mean) / jnp.sqrt(var + _LN_EPS) * params["ln_gamma"] + params["ln_beta"]
    return y.reshape(B, maxdim, D)


# ---------------------------------------------------------------------------
if __name__ == "__main__":
    key = jax.random.PRNGKey(0)

    # Small deterministic config
    B, H, W = 2, 8, 8
    patch_size, channels, embed_dim, nC = 4, 3, 128, 1
    params, cfg = init_dpx_embedder_params(
        key, embed_dim=embed_dim, patch_size=patch_size, channels=channels,
        num_cls_tokens=nC)                       # weight stored bf16 (default)
    T = cfg["token_dim"]                          # 3*16 + 16 = 64

    # Synthetic extractor result: batch 0 has 5 segments, batch 1 has 31
    # (globally unique labels so the unique()/bincount() slicing matches torch).
    n0, n1 = 5, 31
    seg0 = (np.arange(H * W) % n0).reshape(H, W)
    seg1 = n0 + (np.arange(H * W) % n1).reshape(H, W)
    seg = jnp.asarray(np.stack([seg0, seg1]).astype(np.int32))            # (B,H,W)
    byx0 = jnp.asarray(np.repeat(np.arange(B), H * W).astype(np.int32))   # (B*H*W,)
    n_tokens = n0 + n1
    fV_raw = jax.random.normal(jax.random.fold_in(key, 1), (n_tokens, T), jnp.float32)

    maxdim = n1 + 1                               # 32
    # tile_m=16 -> 2 row tiles per batch, 2 chunks per tile: exercises the
    # j==0 / j>0 gather paths, the all-pad-tile skip and the pad-chunk skip.
    tile_m_test = 16

    params_f32 = dict(params,
                      proj_weight_t=params["proj_weight_t"].astype(jnp.float32))
    ref = _reference_forward(params_f32, cfg, seg, byx0, fV_raw)

    # 1) strict check: f32 MXU operands
    out32, seg_out, amask = dpx_embedder_forward(
        params_f32, cfg, seg, byx0, fV_raw, tile_m=tile_m_test)
    out32 = jax.block_until_ready(out32)
    np.testing.assert_allclose(np.asarray(out32), np.asarray(ref),
                               rtol=5e-4, atol=5e-4)

    # 2) default fast path: bf16 tokens/weight on the MXU (f32 accumulation)
    out16, _, _ = dpx_embedder_forward(params, cfg, seg, byx0, fV_raw,
                                       tile_m=tile_m_test)
    out16 = jax.block_until_ready(out16)
    np.testing.assert_allclose(np.asarray(out16), np.asarray(ref),
                               rtol=3e-2, atol=3e-2)

    # 3) auto tile selection (VMEM-budgeted) on the bf16 path
    out_auto, _, _ = dpx_embedder_forward(params, cfg, seg, byx0, fV_raw)
    out_auto = jax.block_until_ready(out_auto)
    np.testing.assert_allclose(np.asarray(out_auto), np.asarray(ref),
                               rtol=3e-2, atol=3e-2)

    assert out32.shape == (B, maxdim, embed_dim)
    assert amask.shape == (B, maxdim + nC - 1)
    assert np.asarray(amask).sum(-1).tolist() == [n0 + nC, n1 + nC]

    print("KERNEL_OK")
</pallas_src>

<mosaic_0001>
module attributes {stable_mosaic.version = 11 : i64} {
  func.func @_embed_kernel(%arg0: i32, %arg1: i32, %arg2: memref<4xi32, #tpu.memory_space<smem>>, %arg3: memref<4xi32, #tpu.memory_space<smem>>, %arg4: memref<8x128xf32, #tpu.memory_space<vmem>>, %arg5: memref<64x128xf32, #tpu.memory_space<vmem>>, %arg6: memref<53x64xf32, #tpu.memory_space<any>>, %arg7: memref<1x16x128xf32, #tpu.memory_space<vmem>>, %arg8: memref<16x64xf32, #tpu.memory_space<vmem>>, %arg9: memref<2x!tpu.dma_semaphore, #tpu.memory_space<semaphore_mem>>) attributes {dimension_semantics = [#tpu.dimension_semantics<parallel>, #tpu.dimension_semantics<parallel>], iteration_bounds = array<i64: 2, 2>, scalar_prefetch = 2 : i64, scratch_operands = 2 : i64, tpu.core_type = #tpu.core_type<tc>, window_params = [{pipeline_mode = #tpu.pipeline_mode<synchronous>, transform_indices = @transform_0, window_bounds = array<i64: 8, 128>}, {pipeline_mode = #tpu.pipeline_mode<synchronous>, transform_indices = @transform_1, window_bounds = array<i64: 64, 128>}, {}, {transform_indices = @transform_3, window_bounds = array<i64: 1, 16, 128>}]} {
    %c2_i32 = arith.constant 2 : i32
    %0 = arith.muli %arg0, %c2_i32 : i32
    %1 = arith.addi %0, %arg1 : i32
    %2 = arith.index_cast %1 : i32 to index
    %3 = memref.load %arg2[%2] : memref<4xi32, #tpu.memory_space<smem>>
    %4 = arith.index_cast %1 : i32 to index
    %5 = memref.load %arg3[%4] : memref<4xi32, #tpu.memory_space<smem>>
    %c0 = arith.constant 0 : index
    %c0_0 = arith.constant 0 : index
    %6 = vector.load %arg4[%c0, %c0_0] : memref<8x128xf32, #tpu.memory_space<vmem>>, vector<1x128xf32>
    %c1 = arith.constant 1 : index
    %c0_1 = arith.constant 0 : index
    %7 = vector.load %arg4[%c1, %c0_1] : memref<8x128xf32, #tpu.memory_space<vmem>>, vector<1x128xf32>
    %c2 = arith.constant 2 : index
    %c0_2 = arith.constant 0 : index
    %8 = vector.load %arg4[%c2, %c0_2] : memref<8x128xf32, #tpu.memory_space<vmem>>, vector<1x128xf32>
    %c3 = arith.constant 3 : index
    %c0_3 = arith.constant 0 : index
    %9 = vector.load %arg4[%c3, %c0_3] : memref<8x128xf32, #tpu.memory_space<vmem>>, vector<1x128xf32>
    %c0_i32 = arith.constant 0 : i32
    %10 = arith.cmpi sgt, %5, %c0_i32 : i32
    %11 = arith.extui %10 : i1 to i32
    %c0_i32_4 = arith.constant 0 : i32
    %12 = arith.cmpi ne, %11, %c0_i32_4 : i32
    scf.if %12 {
      %c0_i32_17 = arith.constant 0 : i32
      %40 = arith.addi %3, %c0_i32_17 : i32
      %c0_i32_18 = arith.constant 0 : i32
      %c0_i32_19 = arith.constant 0 : i32
      %41 = tpu.memref_slice %arg6[%40, %c0_i32_19] : memref<53x64xf32, #tpu.memory_space<any>> -> memref<8x64xf32, #tpu.memory_space<any>>
      %c0_i32_20 = arith.constant 0 : i32
      %c0_i32_21 = arith.constant 0 : i32
      %42 = tpu.memref_slice %arg8[%c0_i32_20, %c0_i32_21] : memref<16x64xf32, #tpu.memory_space<vmem>> -> memref<8x64xf32, #tpu.memory_space<vmem>>
      %43 = tpu.memref_slice %arg9[%c0_i32_18] : memref<2x!tpu.dma_semaphore, #tpu.memory_space<semaphore_mem>> -> memref<1x!tpu.dma_semaphore, #tpu.memory_space<semaphore_mem>>
      %44 = tpu.memref_squeeze %43 : memref<1x!tpu.dma_semaphore, #tpu.memory_space<semaphore_mem>> -> memref<!tpu.dma_semaphore, #tpu.memory_space<semaphore_mem>>
      tpu.enqueue_dma source(%41 : memref<8x64xf32, #tpu.memory_space<any>>) target(%42 : memref<8x64xf32, #tpu.memory_space<vmem>>) target_semaphore(%44 : memref<!tpu.dma_semaphore, #tpu.memory_space<semaphore_mem>>)
    } else {
    }
    %c8_i32 = arith.constant 8 : i32
    %13 = arith.cmpi sgt, %5, %c8_i32 : i32
    %14 = arith.extui %13 : i1 to i32
    %c0_i32_5 = arith.constant 0 : i32
    %15 = arith.cmpi ne, %14, %c0_i32_5 : i32
    scf.if %15 {
      %c8_i32_17 = arith.constant 8 : i32
      %40 = arith.addi %3, %c8_i32_17 : i32
      %c1_i32_18 = arith.constant 1 : i32
      %c0_i32_19 = arith.constant 0 : i32
      %41 = tpu.memref_slice %arg6[%40, %c0_i32_19] : memref<53x64xf32, #tpu.memory_space<any>> -> memref<8x64xf32, #tpu.memory_space<any>>
      %c8_i32_20 = arith.constant 8 : i32
      %c0_i32_21 = arith.constant 0 : i32
      %42 = tpu.memref_slice %arg8[%c8_i32_20, %c0_i32_21] : memref<16x64xf32, #tpu.memory_space<vmem>> -> memref<8x64xf32, #tpu.memory_space<vmem>>
      %43 = tpu.memref_slice %arg9[%c1_i32_18] : memref<2x!tpu.dma_semaphore, #tpu.memory_space<semaphore_mem>> -> memref<1x!tpu.dma_semaphore, #tpu.memory_space<semaphore_mem>>
      %44 = tpu.memref_squeeze %43 : memref<1x!tpu.dma_semaphore, #tpu.memory_space<semaphore_mem>> -> memref<!tpu.dma_semaphore, #tpu.memory_space<semaphore_mem>>
      tpu.enqueue_dma source(%41 : memref<8x64xf32, #tpu.memory_space<any>>) target(%42 : memref<8x64xf32, #tpu.memory_space<vmem>>) target_semaphore(%44 : memref<!tpu.dma_semaphore, #tpu.memory_space<semaphore_mem>>)
    } else {
    }
    %c0_i32_6 = arith.constant 0 : i32
    %16 = arith.cmpi eq, %arg1, %c0_i32_6 : i32
    %c1_i32 = arith.constant 1 : i32
    %c0_i32_7 = arith.constant 0 : i32
    %17 = arith.select %16, %c1_i32, %c0_i32_7 : i32
    %18 = tpu.iota {dimensions = array<i32: 0>} : vector<8x1xi32>
    %c0_i32_8 = arith.constant 0 : i32
    %19 = vector.broadcast %c0_i32_8 : i32 to vector<8x1xi32>
    %20 = arith.addi %18, %19 : vector<8x1xi32>
    %21 = vector.shape_cast %8 : vector<1x128xf32> to vector<1x128xf32>
    %22 = vector.broadcast %21 : vector<1x128xf32> to vector<8x128xf32>
    %c0_i32_9 = arith.constant 0 : i32
    %23 = arith.cmpi sgt, %5, %c0_i32_9 : i32
    %24 = arith.extui %23 : i1 to i32
    %c0_i32_10 = arith.constant 0 : i32
    %25 = arith.cmpi ne, %24, %c0_i32_10 : i32
    scf.if %25 {
      %c0_i32_17 = arith.constant 0 : i32
      %40 = arith.addi %3, %c0_i32_17 : i32
      %c0_i32_18 = arith.constant 0 : i32
      %c0_i32_19 = arith.constant 0 : i32
      %41 = tpu.memref_slice %arg6[%40, %c0_i32_19] : memref<53x64xf32, #tpu.memory_space<any>> -> memref<8x64xf32, #tpu.memory_space<any>>
      %c0_i32_20 = arith.constant 0 : i32
      %c0_i32_21 = arith.constant 0 : i32
      %42 = tpu.memref_slice %arg8[%c0_i32_20, %c0_i32_21] : memref<16x64xf32, #tpu.memory_space<vmem>> -> memref<8x64xf32, #tpu.memory_space<vmem>>
      %43 = tpu.memref_slice %arg9[%c0_i32_18] : memref<2x!tpu.dma_semaphore, #tpu.memory_space<semaphore_mem>> -> memref<1x!tpu.dma_semaphore, #tpu.memory_space<semaphore_mem>>
      %44 = tpu.memref_squeeze %43 : memref<1x!tpu.dma_semaphore, #tpu.memory_space<semaphore_mem>> -> memref<!tpu.dma_semaphore, #tpu.memory_space<semaphore_mem>>
      tpu.wait_dma2 semaphore(%44 : memref<!tpu.dma_semaphore, #tpu.memory_space<semaphore_mem>>) src(%41 : memref<8x64xf32, #tpu.memory_space<any>>) dst(%42 : memref<8x64xf32, #tpu.memory_space<vmem>>)
      %c0_22 = arith.constant 0 : index
      %c0_23 = arith.constant 0 : index
      %45 = vector.load %arg8[%c0_22, %c0_23] : memref<16x64xf32, #tpu.memory_space<vmem>>, vector<8x64xf32>
      %c0_24 = arith.constant 0 : index
      %c0_25 = arith.constant 0 : index
      %46 = vector.load %arg5[%c0_24, %c0_25] : memref<64x128xf32, #tpu.memory_space<vmem>>, vector<64x128xf32>
      %cst = arith.constant dense<0.000000e+00> : vector<8x128xf32>
      %47 = tpu.matmul %45, %46, %cst {dimension_numbers = #tpu.dot_dimension_numbers<[1], [0], [0], [1], [0, 0, 1, 1], [], []>} : vector<8x64xf32>, vector<64x128xf32>, vector<8x128xf32> -> vector<8x128xf32>
      %48 = vector.broadcast %6 : vector<1x128xf32> to vector<8x128xf32>
      %49 = arith.addf %47, %48 : vector<8x128xf32>
      %cst_26 = arith.constant dense<0.000000e+00> : vector<8xf32>
      %50 = vector.multi_reduction <add>, %49, %cst_26 [1] : vector<8x128xf32> to vector<8xf32>
      %51 = vector.shape_cast %50 : vector<8xf32> to vector<8x1xf32>
      %cst_27 = arith.constant 1.280000e+02 : f32
      %52 = vector.broadcast %cst_27 : f32 to vector<8x1xf32>
      %53 = arith.divf %51, %52 : vector<8x1xf32>
      %54 = arith.mulf %49, %49 : vector<8x128xf32>
      %cst_28 = arith.constant dense<0.000000e+00> : vector<8xf32>
      %55 = vector.multi_reduction <add>, %54, %cst_28 [1] : vector<8x128xf32> to vector<8xf32>
      %56 = vector.shape_cast %55 : vector<8xf32> to vector<8x1xf32>
      %cst_29 = arith.constant 1.280000e+02 : f32
      %57 = vector.broadcast %cst_29 : f32 to vector<8x1xf32>
      %58 = arith.divf %56, %57 : vector<8x1xf32>
      %59 = arith.mulf %53, %53 : vector<8x1xf32>
      %60 = arith.subf %58, %59 : vector<8x1xf32>
      %cst_30 = arith.constant 9.99999974E-6 : f32
      %61 = vector.broadcast %cst_30 : f32 to vector<8x1xf32>
      %62 = arith.addf %60, %61 : vector<8x1xf32>
      %63 = math.rsqrt %62 : vector<8x1xf32>
      %64 = vector.broadcast %53 : vector<8x1xf32> to vector<8x128xf32>
      %65 = arith.subf %49, %64 : vector<8x128xf32>
      %66 = vector.broadcast %63 : vector<8x1xf32> to vector<8x128xf32>
      %67 = arith.mulf %65, %66 : vector<8x128xf32>
      %68 = vector.broadcast %7 : vector<1x128xf32> to vector<8x128xf32>
      %69 = arith.mulf %67, %68 : vector<8x128xf32>
      %70 = vector.broadcast %8 : vector<1x128xf32> to vector<8x128xf32>
      %71 = arith.addf %69, %70 : vector<8x128xf32>
      %72 = vector.broadcast %17 : i32 to vector<8x1xi32>
      %73 = arith.cmpi sge, %20, %72 : vector<8x1xi32>
      %74 = vector.broadcast %5 : i32 to vector<8x1xi32>
      %75 = arith.cmpi slt, %20, %74 : vector<8x1xi32>
      %76 = arith.andi %73, %75 : vector<8x1xi1>
      %77 = vector.shape_cast %76 : vector<8x1xi1> to vector<8x1xi1>
      %78 = vector.broadcast %77 : vector<8x1xi1> to vector<8x128xi1>
      %79 = arith.select %78, %71, %22 : vector<8x128xi1>, vector<8x128xf32>
      %c1_i32_31 = arith.constant 1 : i32
      %80 = vector.broadcast %c1_i32_31 : i32 to vector<8x1xi32>
      %81 = arith.cmpi slt, %20, %80 : vector<8x1xi32>
      %c0_i32_32 = arith.constant 0 : i32
      %82 = arith.cmpi eq, %arg1, %c0_i32_32 : i32
      %83 = vector.broadcast %82 : i1 to vector<8x1xi1>
      %84 = arith.andi %81, %83 : vector<8x1xi1>
      %85 = vector.shape_cast %84 : vector<8x1xi1> to vector<8x1xi1>
      %86 = vector.broadcast %85 : vector<8x1xi1> to vector<8x128xi1>
      %87 = vector.shape_cast %9 : vector<1x128xf32> to vector<1x128xf32>
      %88 = vector.broadcast %87 : vector<1x128xf32> to vector<8x128xf32>
      %89 = arith.select %86, %88, %79 : vector<8x128xi1>, vector<8x128xf32>
      %c0_33 = arith.constant 0 : index
      %c0_34 = arith.constant 0 : index
      %c0_35 = arith.constant 0 : index
      %90 = vector.load %arg7[%c0_33, %c0_34, %c0_35] : memref<1x16x128xf32, #tpu.memory_space<vmem>>, vector<1x8x128xf32>
      %91 = vector.shape_cast %90 : vector<1x8x128xf32> to vector<8x128xf32>
      %92 = vector.shape_cast %89 : vector<8x128xf32> to vector<1x8x128xf32>
      tpu.vector_store %arg7[%c0_33, %c0_34, %c0_35], %92 {strides = array<i32>} : memref<1x16x128xf32, #tpu.memory_space<vmem>>, vector<1x8x128xf32>,
    } else {
    }
    %true = arith.constant true
    %26 = arith.xori %23, %true : i1
    %27 = arith.extui %26 : i1 to i32
    %c0_i32_11 = arith.constant 0 : i32
    %28 = arith.cmpi ne, %27, %c0_i32_11 : i32
    scf.if %28 {
      %c1_i32_17 = arith.constant 1 : i32
      %40 = vector.broadcast %c1_i32_17 : i32 to vector<8x1xi32>
      %41 = arith.cmpi slt, %20, %40 : vector<8x1xi32>
      %c0_i32_18 = arith.constant 0 : i32
      %42 = arith.cmpi eq, %arg1, %c0_i32_18 : i32
      %43 = vector.broadcast %42 : i1 to vector<8x1xi1>
      %44 = arith.andi %41, %43 : vector<8x1xi1>
      %45 = vector.shape_cast %44 : vector<8x1xi1> to vector<8x1xi1>
      %46 = vector.broadcast %45 : vector<8x1xi1> to vector<8x128xi1>
      %47 = vector.shape_cast %9 : vector<1x128xf32> to vector<1x128xf32>
      %48 = vector.broadcast %47 : vector<1x128xf32> to vector<8x128xf32>
      %49 = arith.select %46, %48, %22 : vector<8x128xi1>, vector<8x128xf32>
      %c0_19 = arith.constant 0 : index
      %c0_20 = arith.constant 0 : index
      %c0_21 = arith.constant 0 : index
      %50 = vector.load %arg7[%c0_19, %c0_20, %c0_21] : memref<1x16x128xf32, #tpu.memory_space<vmem>>, vector<1x8x128xf32>
      %51 = vector.shape_cast %50 : vector<1x8x128xf32> to vector<8x128xf32>
      %52 = vector.shape_cast %49 : vector<8x128xf32> to vector<1x8x128xf32>
      tpu.vector_store %arg7[%c0_19, %c0_20, %c0_21], %52 {strides = array<i32>} : memref<1x16x128xf32, #tpu.memory_space<vmem>>, vector<1x8x128xf32>,
    } else {
    }
    %29 = tpu.iota {dimensions = array<i32: 0>} : vector<8x1xi32>
    %c8_i32_12 = arith.constant 8 : i32
    %30 = vector.broadcast %c8_i32_12 : i32 to vector<8x1xi32>
    %31 = arith.addi %29, %30 : vector<8x1xi32>
    %32 = vector.shape_cast %8 : vector<1x128xf32> to vector<1x128xf32>
    %33 = vector.broadcast %32 : vector<1x128xf32> to vector<8x128xf32>
    %c8_i32_13 = arith.constant 8 : i32
    %34 = arith.cmpi sgt, %5, %c8_i32_13 : i32
    %35 = arith.extui %34 : i1 to i32
    %c0_i32_14 = arith.constant 0 : i32
    %36 = arith.cmpi ne, %35, %c0_i32_14 : i32
    scf.if %36 {
      %c8_i32_17 = arith.constant 8 : i32
      %40 = arith.addi %3, %c8_i32_17 : i32
      %c1_i32_18 = arith.constant 1 : i32
      %c0_i32_19 = arith.constant 0 : i32
      %41 = tpu.memref_slice %arg6[%40, %c0_i32_19] : memref<53x64xf32, #tpu.memory_space<any>> -> memref<8x64xf32, #tpu.memory_space<any>>
      %c8_i32_20 = arith.constant 8 : i32
      %c0_i32_21 = arith.constant 0 : i32
      %42 = tpu.memref_slice %arg8[%c8_i32_20, %c0_i32_21] : memref<16x64xf32, #tpu.memory_space<vmem>> -> memref<8x64xf32, #tpu.memory_space<vmem>>
      %43 = tpu.memref_slice %arg9[%c1_i32_18] : memref<2x!tpu.dma_semaphore, #tpu.memory_space<semaphore_mem>> -> memref<1x!tpu.dma_semaphore, #tpu.memory_space<semaphore_mem>>
      %44 = tpu.memref_squeeze %43 : memref<1x!tpu.dma_semaphore, #tpu.memory_space<semaphore_mem>> -> memref<!tpu.dma_semaphore, #tpu.memory_space<semaphore_mem>>
      tpu.wait_dma2 semaphore(%44 : memref<!tpu.dma_semaphore, #tpu.memory_space<semaphore_mem>>) src(%41 : memref<8x64xf32, #tpu.memory_space<any>>) dst(%42 : memref<8x64xf32, #tpu.memory_space<vmem>>)
      %c8 = arith.constant 8 : index
      %c0_22 = arith.constant 0 : index
      %45 = vector.load %arg8[%c8, %c0_22] : memref<16x64xf32, #tpu.memory_space<vmem>>, vector<8x64xf32>
      %c0_23 = arith.constant 0 : index
      %c0_24 = arith.constant 0 : index
      %46 = vector.load %arg5[%c0_23, %c0_24] : memref<64x128xf32, #tpu.memory_space<vmem>>, vector<64x128xf32>
      %cst = arith.constant dense<0.000000e+00> : vector<8x128xf32>
      %47 = tpu.matmul %45, %46, %cst {dimension_numbers = #tpu.dot_dimension_numbers<[1], [0], [0], [1], [0, 0, 1, 1], [], []>} : vector<8x64xf32>, vector<64x128xf32>, vector<8x128xf32> -> vector<8x128xf32>
      %48 = vector.broadcast %6 : vector<1x128xf32> to vector<8x128xf32>
      %49 = arith.addf %47, %48 : vector<8x128xf32>
      %cst_25 = arith.constant dense<0.000000e+00> : vector<8xf32>
      %50 = vector.multi_reduction <add>, %49, %cst_25 [1] : vector<8x128xf32> to vector<8xf32>
      %51 = vector.shape_cast %50 : vector<8xf32> to vector<8x1xf32>
      %cst_26 = arith.constant 1.280000e+02 : f32
      %52 = vector.broadcast %cst_26 : f32 to vector<8x1xf32>
      %53 = arith.divf %51, %52 : vector<8x1xf32>
      %54 = arith.mulf %49, %49 : vector<8x128xf32>
      %cst_27 = arith.constant dense<0.000000e+00> : vector<8xf32>
      %55 = vector.multi_reduction <add>, %54, %cst_27 [1] : vector<8x128xf32> to vector<8xf32>
      %56 = vector.shape_cast %55 : vector<8xf32> to vector<8x1xf32>
      %cst_28 = arith.constant 1.280000e+02 : f32
      %57 = vector.broadcast %cst_28 : f32 to vector<8x1xf32>
      %58 = arith.divf %56, %57 : vector<8x1xf32>
      %59 = arith.mulf %53, %53 : vector<8x1xf32>
      %60 = arith.subf %58, %59 : vector<8x1xf32>
      %cst_29 = arith.constant 9.99999974E-6 : f32
      %61 = vector.broadcast %cst_29 : f32 to vector<8x1xf32>
      %62 = arith.addf %60, %61 : vector<8x1xf32>
      %63 = math.rsqrt %62 : vector<8x1xf32>
      %64 = vector.broadcast %53 : vector<8x1xf32> to vector<8x128xf32>
      %65 = arith.subf %49, %64 : vector<8x128xf32>
      %66 = vector.broadcast %63 : vector<8x1xf32> to vector<8x128xf32>
      %67 = arith.mulf %65, %66 : vector<8x128xf32>
      %68 = vector.broadcast %7 : vector<1x128xf32> to vector<8x128xf32>
      %69 = arith.mulf %67, %68 : vector<8x128xf32>
      %70 = vector.broadcast %8 : vector<1x128xf32> to vector<8x128xf32>
      %71 = arith.addf %69, %70 : vector<8x128xf32>
      %72 = vector.broadcast %17 : i32 to vector<8x1xi32>
      %73 = arith.cmpi sge, %31, %72 : vector<8x1xi32>
      %74 = vector.broadcast %5 : i32 to vector<8x1xi32>
      %75 = arith.cmpi slt, %31, %74 : vector<8x1xi32>
      %76 = arith.andi %73, %75 : vector<8x1xi1>
      %77 = vector.shape_cast %76 : vector<8x1xi1> to vector<8x1xi1>
      %78 = vector.broadcast %77 : vector<8x1xi1> to vector<8x128xi1>
      %79 = arith.select %78, %71, %33 : vector<8x128xi1>, vector<8x128xf32>
      %c0_30 = arith.constant 0 : index
      %c8_31 = arith.constant 8 : index
      %c0_32 = arith.constant 0 : index
      %80 = vector.load %arg7[%c0_30, %c8_31, %c0_32] : memref<1x16x128xf32, #tpu.memory_space<vmem>>, vector<1x8x128xf32>
      %81 = vector.shape_cast %80 : vector<1x8x128xf32> to vector<8x128xf32>
      %82 = vector.shape_cast %79 : vector<8x128xf32> to vector<1x8x128xf32>
      tpu.vector_store %arg7[%c0_30, %c8_31, %c0_32], %82 {strides = array<i32>} : memref<1x16x128xf32, #tpu.memory_space<vmem>>, vector<1x8x128xf32>,
    } else {
    }
    %true_15 = arith.constant true
    %37 = arith.xori %34, %true_15 : i1
    %38 = arith.extui %37 : i1 to i32
    %c0_i32_16 = arith.constant 0 : i32
    %39 = arith.cmpi ne, %38, %c0_i32_16 : i32
    scf.if %39 {
      %c0_17 = arith.constant 0 : index
      %c8 = arith.constant 8 : index
      %c0_18 = arith.constant 0 : index
      %40 = vector.load %arg7[%c0_17, %c8, %c0_18] : memref<1x16x128xf32, #tpu.memory_space<vmem>>, vector<1x8x128xf32>
      %41 = vector.shape_cast %40 : vector<1x8x128xf32> to vector<8x128xf32>
      %42 = vector.shape_cast %33 : vector<8x128xf32> to vector<1x8x128xf32>
      tpu.vector_store %arg7[%c0_17, %c8, %c0_18], %42 {strides = array<i32>} : memref<1x16x128xf32, #tpu.memory_space<vmem>>, vector<1x8x128xf32>,
    } else {
    }
    return
  }
  func.func @transform_0(%arg0: i32, %arg1: i32, %arg2: memref<4xi32, #tpu.memory_space<smem>>, %arg3: memref<4xi32, #tpu.memory_space<smem>>) -> (i32, i32) {
    %c0_i32 = arith.constant 0 : i32
    %c0_i32_0 = arith.constant 0 : i32
    %c0_i32_1 = arith.constant 0 : i32
    return %c0_i32, %c0_i32_0 : i32, i32
  }
  func.func @transform_1(%arg0: i32, %arg1: i32, %arg2: memref<4xi32, #tpu.memory_space<smem>>, %arg3: memref<4xi32, #tpu.memory_space<smem>>) -> (i32, i32) {
    %c0_i32 = arith.constant 0 : i32
    %c0_i32_0 = arith.constant 0 : i32
    %c0_i32_1 = arith.constant 0 : i32
    return %c0_i32, %c0_i32_0 : i32, i32
  }
  func.func @transform_3(%arg0: i32, %arg1: i32, %arg2: memref<4xi32, #tpu.memory_space<smem>>, %arg3: memref<4xi32, #tpu.memory_space<smem>>) -> (i32, i32, i32) {
    %c0_i32 = arith.constant 0 : i32
    %c0_i32_0 = arith.constant 0 : i32
    return %arg0, %arg1, %c0_i32 : i32, i32, i32
  }
}

module attributes {stable_mosaic.version = 11 : i64} {
  func.func @_embed_kernel(%arg0: i32, %arg1: i32, %arg2: memref<4xi32, #tpu.memory_space<smem>>, %arg3: memref<4xi32, #tpu.memory_space<smem>>, %arg4: memref<8x128xf32, #tpu.memory_space<vmem>>, %arg5: memref<64x128xf32, #tpu.memory_space<vmem>>, %arg6: memref<53x64xf32, #tpu.memory_space<any>>, %arg7: memref<1x16x128xf32, #tpu.memory_space<vmem>>, %arg8: memref<16x64xf32, #tpu.memory_space<vmem>>, %arg9: memref<2x!tpu.dma_semaphore, #tpu.memory_space<semaphore_mem>>) attributes {dimension_semantics = [#tpu.dimension_semantics<parallel>, #tpu.dimension_semantics<parallel>], iteration_bounds = array<i64: 2, 2>, scalar_prefetch = 2 : i64, scratch_operands = 2 : i64, tpu.core_type = #tpu.core_type<tc>, window_params = [{pipeline_mode = #tpu.pipeline_mode<synchronous>, transform_indices = @transform_0, window_bounds = array<i64: 8, 128>}, {pipeline_mode = #tpu.pipeline_mode<synchronous>, transform_indices = @transform_1, window_bounds = array<i64: 64, 128>}, {}, {transform_indices = @transform_3, window_bounds = array<i64: 1, 16, 128>}]} {
    %c2_i32 = arith.constant 2 : i32
    %0 = arith.muli %arg0, %c2_i32 : i32
    %1 = arith.addi %0, %arg1 : i32
    %2 = arith.index_cast %1 : i32 to index
    %3 = memref.load %arg2[%2] : memref<4xi32, #tpu.memory_space<smem>>
    %4 = arith.index_cast %1 : i32 to index
    %5 = memref.load %arg3[%4] : memref<4xi32, #tpu.memory_space<smem>>
    %c0 = arith.constant 0 : index
    %c0_0 = arith.constant 0 : index
    %6 = vector.load %arg4[%c0, %c0_0] : memref<8x128xf32, #tpu.memory_space<vmem>>, vector<1x128xf32>
    %c1 = arith.constant 1 : index
    %c0_1 = arith.constant 0 : index
    %7 = vector.load %arg4[%c1, %c0_1] : memref<8x128xf32, #tpu.memory_space<vmem>>, vector<1x128xf32>
    %c2 = arith.constant 2 : index
    %c0_2 = arith.constant 0 : index
    %8 = vector.load %arg4[%c2, %c0_2] : memref<8x128xf32, #tpu.memory_space<vmem>>, vector<1x128xf32>
    %c3 = arith.constant 3 : index
    %c0_3 = arith.constant 0 : index
    %9 = vector.load %arg4[%c3, %c0_3] : memref<8x128xf32, #tpu.memory_space<vmem>>, vector<1x128xf32>
    %c0_i32 = arith.constant 0 : i32
    %10 = arith.cmpi sgt, %5, %c0_i32 : i32
    %11 = arith.extui %10 : i1 to i32
    %c0_i32_4 = arith.constant 0 : i32
    %12 = arith.cmpi ne, %11, %c0_i32_4 : i32
    scf.if %12 {
      %c0_i32_17 = arith.constant 0 : i32
      %40 = arith.addi %3, %c0_i32_17 : i32
      %c0_i32_18 = arith.constant 0 : i32
      %c0_i32_19 = arith.constant 0 : i32
      %41 = tpu.memref_slice %arg6[%40, %c0_i32_19] : memref<53x64xf32, #tpu.memory_space<any>> -> memref<8x64xf32, #tpu.memory_space<any>>
      %c0_i32_20 = arith.constant 0 : i32
      %c0_i32_21 = arith.constant 0 : i32
      %42 = tpu.memref_slice %arg8[%c0_i32_20, %c0_i32_21] : memref<16x64xf32, #tpu.memory_space<vmem>> -> memref<8x64xf32, #tpu.memory_space<vmem>>
      %43 = tpu.memref_slice %arg9[%c0_i32_18] : memref<2x!tpu.dma_semaphore, #tpu.memory_space<semaphore_mem>> -> memref<1x!tpu.dma_semaphore, #tpu.memory_space<semaphore_mem>>
      %44 = tpu.memref_squeeze %43 : memref<1x!tpu.dma_semaphore, #tpu.memory_space<semaphore_mem>> -> memref<!tpu.dma_semaphore, #tpu.memory_space<semaphore_mem>>
      tpu.enqueue_dma source(%41 : memref<8x64xf32, #tpu.memory_space<any>>) target(%42 : memref<8x64xf32, #tpu.memory_space<vmem>>) target_semaphore(%44 : memref<!tpu.dma_semaphore, #tpu.memory_space<semaphore_mem>>)
    } else {
    }
    %c8_i32 = arith.constant 8 : i32
    %13 = arith.cmpi sgt, %5, %c8_i32 : i32
    %14 = arith.extui %13 : i1 to i32
    %c0_i32_5 = arith.constant 0 : i32
    %15 = arith.cmpi ne, %14, %c0_i32_5 : i32
    scf.if %15 {
      %c8_i32_17 = arith.constant 8 : i32
      %40 = arith.addi %3, %c8_i32_17 : i32
      %c1_i32_18 = arith.constant 1 : i32
      %c0_i32_19 = arith.constant 0 : i32
      %41 = tpu.memref_slice %arg6[%40, %c0_i32_19] : memref<53x64xf32, #tpu.memory_space<any>> -> memref<8x64xf32, #tpu.memory_space<any>>
      %c8_i32_20 = arith.constant 8 : i32
      %c0_i32_21 = arith.constant 0 : i32
      %42 = tpu.memref_slice %arg8[%c8_i32_20, %c0_i32_21] : memref<16x64xf32, #tpu.memory_space<vmem>> -> memref<8x64xf32, #tpu.memory_space<vmem>>
      %43 = tpu.memref_slice %arg9[%c1_i32_18] : memref<2x!tpu.dma_semaphore, #tpu.memory_space<semaphore_mem>> -> memref<1x!tpu.dma_semaphore, #tpu.memory_space<semaphore_mem>>
      %44 = tpu.memref_squeeze %43 : memref<1x!tpu.dma_semaphore, #tpu.memory_space<semaphore_mem>> -> memref<!tpu.dma_semaphore, #tpu.memory_space<semaphore_mem>>
      tpu.enqueue_dma source(%41 : memref<8x64xf32, #tpu.memory_space<any>>) target(%42 : memref<8x64xf32, #tpu.memory_space<vmem>>) target_semaphore(%44 : memref<!tpu.dma_semaphore, #tpu.memory_space<semaphore_mem>>)
    } else {
    }
    %c0_i32_6 = arith.constant 0 : i32
    %16 = arith.cmpi eq, %arg1, %c0_i32_6 : i32
    %c1_i32 = arith.constant 1 : i32
    %c0_i32_7 = arith.constant 0 : i32
    %17 = arith.select %16, %c1_i32, %c0_i32_7 : i32
    %18 = tpu.iota {dimensions = array<i32: 0>} : vector<8x1xi32>
    %c0_i32_8 = arith.constant 0 : i32
    %19 = vector.broadcast %c0_i32_8 : i32 to vector<8x1xi32>
    %20 = arith.addi %18, %19 : vector<8x1xi32>
    %21 = vector.shape_cast %8 : vector<1x128xf32> to vector<1x128xf32>
    %22 = vector.broadcast %21 : vector<1x128xf32> to vector<8x128xf32>
    %c0_i32_9 = arith.constant 0 : i32
    %23 = arith.cmpi sgt, %5, %c0_i32_9 : i32
    %24 = arith.extui %23 : i1 to i32
    %c0_i32_10 = arith.constant 0 : i32
    %25 = arith.cmpi ne, %24, %c0_i32_10 : i32
    scf.if %25 {
      %c0_i32_17 = arith.constant 0 : i32
      %40 = arith.addi %3, %c0_i32_17 : i32
      %c0_i32_18 = arith.constant 0 : i32
      %c0_i32_19 = arith.constant 0 : i32
      %41 = tpu.memref_slice %arg6[%40, %c0_i32_19] : memref<53x64xf32, #tpu.memory_space<any>> -> memref<8x64xf32, #tpu.memory_space<any>>
      %c0_i32_20 = arith.constant 0 : i32
      %c0_i32_21 = arith.constant 0 : i32
      %42 = tpu.memref_slice %arg8[%c0_i32_20, %c0_i32_21] : memref<16x64xf32, #tpu.memory_space<vmem>> -> memref<8x64xf32, #tpu.memory_space<vmem>>
      %43 = tpu.memref_slice %arg9[%c0_i32_18] : memref<2x!tpu.dma_semaphore, #tpu.memory_space<semaphore_mem>> -> memref<1x!tpu.dma_semaphore, #tpu.memory_space<semaphore_mem>>
      %44 = tpu.memref_squeeze %43 : memref<1x!tpu.dma_semaphore, #tpu.memory_space<semaphore_mem>> -> memref<!tpu.dma_semaphore, #tpu.memory_space<semaphore_mem>>
      tpu.wait_dma2 semaphore(%44 : memref<!tpu.dma_semaphore, #tpu.memory_space<semaphore_mem>>) src(%41 : memref<8x64xf32, #tpu.memory_space<any>>) dst(%42 : memref<8x64xf32, #tpu.memory_space<vmem>>)
      %c0_22 = arith.constant 0 : index
      %c0_23 = arith.constant 0 : index
      %45 = vector.load %arg8[%c0_22, %c0_23] : memref<16x64xf32, #tpu.memory_space<vmem>>, vector<8x64xf32>
      %c0_24 = arith.constant 0 : index
      %c0_25 = arith.constant 0 : index
      %46 = vector.load %arg5[%c0_24, %c0_25] : memref<64x128xf32, #tpu.memory_space<vmem>>, vector<64x128xf32>
      %cst = arith.constant dense<0.000000e+00> : vector<8x128xf32>
      %47 = tpu.matmul %45, %46, %cst {dimension_numbers = #tpu.dot_dimension_numbers<[1], [0], [0], [1], [0, 0, 1, 1], [], []>} : vector<8x64xf32>, vector<64x128xf32>, vector<8x128xf32> -> vector<8x128xf32>
      %48 = vector.broadcast %6 : vector<1x128xf32> to vector<8x128xf32>
      %49 = arith.addf %47, %48 : vector<8x128xf32>
      %cst_26 = arith.constant dense<0.000000e+00> : vector<8xf32>
      %50 = vector.multi_reduction <add>, %49, %cst_26 [1] : vector<8x128xf32> to vector<8xf32>
      %51 = vector.shape_cast %50 : vector<8xf32> to vector<8x1xf32>
      %cst_27 = arith.constant 1.280000e+02 : f32
      %52 = vector.broadcast %cst_27 : f32 to vector<8x1xf32>
      %53 = arith.divf %51, %52 : vector<8x1xf32>
      %54 = arith.mulf %49, %49 : vector<8x128xf32>
      %cst_28 = arith.constant dense<0.000000e+00> : vector<8xf32>
      %55 = vector.multi_reduction <add>, %54, %cst_28 [1] : vector<8x128xf32> to vector<8xf32>
      %56 = vector.shape_cast %55 : vector<8xf32> to vector<8x1xf32>
      %cst_29 = arith.constant 1.280000e+02 : f32
      %57 = vector.broadcast %cst_29 : f32 to vector<8x1xf32>
      %58 = arith.divf %56, %57 : vector<8x1xf32>
      %59 = arith.mulf %53, %53 : vector<8x1xf32>
      %60 = arith.subf %58, %59 : vector<8x1xf32>
      %cst_30 = arith.constant 9.99999974E-6 : f32
      %61 = vector.broadcast %cst_30 : f32 to vector<8x1xf32>
      %62 = arith.addf %60, %61 : vector<8x1xf32>
      %63 = math.rsqrt %62 : vector<8x1xf32>
      %64 = vector.broadcast %53 : vector<8x1xf32> to vector<8x128xf32>
      %65 = arith.subf %49, %64 : vector<8x128xf32>
      %66 = vector.broadcast %63 : vector<8x1xf32> to vector<8x128xf32>
      %67 = arith.mulf %65, %66 : vector<8x128xf32>
      %68 = vector.broadcast %7 : vector<1x128xf32> to vector<8x128xf32>
      %69 = arith.mulf %67, %68 : vector<8x128xf32>
      %70 = vector.broadcast %8 : vector<1x128xf32> to vector<8x128xf32>
      %71 = arith.addf %69, %70 : vector<8x128xf32>
      %72 = vector.broadcast %17 : i32 to vector<8x1xi32>
      %73 = arith.cmpi sge, %20, %72 : vector<8x1xi32>
      %74 = vector.broadcast %5 : i32 to vector<8x1xi32>
      %75 = arith.cmpi slt, %20, %74 : vector<8x1xi32>
      %76 = arith.andi %73, %75 : vector<8x1xi1>
      %77 = vector.shape_cast %76 : vector<8x1xi1> to vector<8x1xi1>
      %78 = vector.broadcast %77 : vector<8x1xi1> to vector<8x128xi1>
      %79 = arith.select %78, %71, %22 : vector<8x128xi1>, vector<8x128xf32>
      %c1_i32_31 = arith.constant 1 : i32
      %80 = vector.broadcast %c1_i32_31 : i32 to vector<8x1xi32>
      %81 = arith.cmpi slt, %20, %80 : vector<8x1xi32>
      %c0_i32_32 = arith.constant 0 : i32
      %82 = arith.cmpi eq, %arg1, %c0_i32_32 : i32
      %83 = vector.broadcast %82 : i1 to vector<8x1xi1>
      %84 = arith.andi %81, %83 : vector<8x1xi1>
      %85 = vector.shape_cast %84 : vector<8x1xi1> to vector<8x1xi1>
      %86 = vector.broadcast %85 : vector<8x1xi1> to vector<8x128xi1>
      %87 = vector.shape_cast %9 : vector<1x128xf32> to vector<1x128xf32>
      %88 = vector.broadcast %87 : vector<1x128xf32> to vector<8x128xf32>
      %89 = arith.select %86, %88, %79 : vector<8x128xi1>, vector<8x128xf32>
      %c0_33 = arith.constant 0 : index
      %c0_34 = arith.constant 0 : index
      %c0_35 = arith.constant 0 : index
      %90 = vector.load %arg7[%c0_33, %c0_34, %c0_35] : memref<1x16x128xf32, #tpu.memory_space<vmem>>, vector<1x8x128xf32>
      %91 = vector.shape_cast %90 : vector<1x8x128xf32> to vector<8x128xf32>
      %92 = vector.shape_cast %89 : vector<8x128xf32> to vector<1x8x128xf32>
      tpu.vector_store %arg7[%c0_33, %c0_34, %c0_35], %92 {strides = array<i32>} : memref<1x16x128xf32, #tpu.memory_space<vmem>>, vector<1x8x128xf32>,
    } else {
    }
    %true = arith.constant true
    %26 = arith.xori %23, %true : i1
    %27 = arith.extui %26 : i1 to i32
    %c0_i32_11 = arith.constant 0 : i32
    %28 = arith.cmpi ne, %27, %c0_i32_11 : i32
    scf.if %28 {
      %c1_i32_17 = arith.constant 1 : i32
      %40 = vector.broadcast %c1_i32_17 : i32 to vector<8x1xi32>
      %41 = arith.cmpi slt, %20, %40 : vector<8x1xi32>
      %c0_i32_18 = arith.constant 0 : i32
      %42 = arith.cmpi eq, %arg1, %c0_i32_18 : i32
      %43 = vector.broadcast %42 : i1 to vector<8x1xi1>
      %44 = arith.andi %41, %43 : vector<8x1xi1>
      %45 = vector.shape_cast %44 : vector<8x1xi1> to vector<8x1xi1>
      %46 = vector.broadcast %45 : vector<8x1xi1> to vector<8x128xi1>
      %47 = vector.shape_cast %9 : vector<1x128xf32> to vector<1x128xf32>
      %48 = vector.broadcast %47 : vector<1x128xf32> to vector<8x128xf32>
      %49 = arith.select %46, %48, %22 : vector<8x128xi1>, vector<8x128xf32>
      %c0_19 = arith.constant 0 : index
      %c0_20 = arith.constant 0 : index
      %c0_21 = arith.constant 0 : index
      %50 = vector.load %arg7[%c0_19, %c0_20, %c0_21] : memref<1x16x128xf32, #tpu.memory_space<vmem>>, vector<1x8x128xf32>
      %51 = vector.shape_cast %50 : vector<1x8x128xf32> to vector<8x128xf32>
      %52 = vector.shape_cast %49 : vector<8x128xf32> to vector<1x8x128xf32>
      tpu.vector_store %arg7[%c0_19, %c0_20, %c0_21], %52 {strides = array<i32>} : memref<1x16x128xf32, #tpu.memory_space<vmem>>, vector<1x8x128xf32>,
    } else {
    }
    %29 = tpu.iota {dimensions = array<i32: 0>} : vector<8x1xi32>
    %c8_i32_12 = arith.constant 8 : i32
    %30 = vector.broadcast %c8_i32_12 : i32 to vector<8x1xi32>
    %31 = arith.addi %29, %30 : vector<8x1xi32>
    %32 = vector.shape_cast %8 : vector<1x128xf32> to vector<1x128xf32>
    %33 = vector.broadcast %32 : vector<1x128xf32> to vector<8x128xf32>
    %c8_i32_13 = arith.constant 8 : i32
    %34 = arith.cmpi sgt, %5, %c8_i32_13 : i32
    %35 = arith.extui %34 : i1 to i32
    %c0_i32_14 = arith.constant 0 : i32
    %36 = arith.cmpi ne, %35, %c0_i32_14 : i32
    scf.if %36 {
      %c8_i32_17 = arith.constant 8 : i32
      %40 = arith.addi %3, %c8_i32_17 : i32
      %c1_i32_18 = arith.constant 1 : i32
      %c0_i32_19 = arith.constant 0 : i32
      %41 = tpu.memref_slice %arg6[%40, %c0_i32_19] : memref<53x64xf32, #tpu.memory_space<any>> -> memref<8x64xf32, #tpu.memory_space<any>>
      %c8_i32_20 = arith.constant 8 : i32
      %c0_i32_21 = arith.constant 0 : i32
      %42 = tpu.memref_slice %arg8[%c8_i32_20, %c0_i32_21] : memref<16x64xf32, #tpu.memory_space<vmem>> -> memref<8x64xf32, #tpu.memory_space<vmem>>
      %43 = tpu.memref_slice %arg9[%c1_i32_18] : memref<2x!tpu.dma_semaphore, #tpu.memory_space<semaphore_mem>> -> memref<1x!tpu.dma_semaphore, #tpu.memory_space<semaphore_mem>>
      %44 = tpu.memref_squeeze %43 : memref<1x!tpu.dma_semaphore, #tpu.memory_space<semaphore_mem>> -> memref<!tpu.dma_semaphore, #tpu.memory_space<semaphore_mem>>
      tpu.wait_dma2 semaphore(%44 : memref<!tpu.dma_semaphore, #tpu.memory_space<semaphore_mem>>) src(%41 : memref<8x64xf32, #tpu.memory_space<any>>) dst(%42 : memref<8x64xf32, #tpu.memory_space<vmem>>)
      %c8 = arith.constant 8 : index
      %c0_22 = arith.constant 0 : index
      %45 = vector.load %arg8[%c8, %c0_22] : memref<16x64xf32, #tpu.memory_space<vmem>>, vector<8x64xf32>
      %c0_23 = arith.constant 0 : index
      %c0_24 = arith.constant 0 : index
      %46 = vector.load %arg5[%c0_23, %c0_24] : memref<64x128xf32, #tpu.memory_space<vmem>>, vector<64x128xf32>
      %cst = arith.constant dense<0.000000e+00> : vector<8x128xf32>
      %47 = tpu.matmul %45, %46, %cst {dimension_numbers = #tpu.dot_dimension_numbers<[1], [0], [0], [1], [0, 0, 1, 1], [], []>} : vector<8x64xf32>, vector<64x128xf32>, vector<8x128xf32> -> vector<8x128xf32>
      %48 = vector.broadcast %6 : vector<1x128xf32> to vector<8x128xf32>
      %49 = arith.addf %47, %48 : vector<8x128xf32>
      %cst_25 = arith.constant dense<0.000000e+00> : vector<8xf32>
      %50 = vector.multi_reduction <add>, %49, %cst_25 [1] : vector<8x128xf32> to vector<8xf32>
      %51 = vector.shape_cast %50 : vector<8xf32> to vector<8x1xf32>
      %cst_26 = arith.constant 1.280000e+02 : f32
      %52 = vector.broadcast %cst_26 : f32 to vector<8x1xf32>
      %53 = arith.divf %51, %52 : vector<8x1xf32>
      %54 = arith.mulf %49, %49 : vector<8x128xf32>
      %cst_27 = arith.constant dense<0.000000e+00> : vector<8xf32>
      %55 = vector.multi_reduction <add>, %54, %cst_27 [1] : vector<8x128xf32> to vector<8xf32>
      %56 = vector.shape_cast %55 : vector<8xf32> to vector<8x1xf32>
      %cst_28 = arith.constant 1.280000e+02 : f32
      %57 = vector.broadcast %cst_28 : f32 to vector<8x1xf32>
      %58 = arith.divf %56, %57 : vector<8x1xf32>
      %59 = arith.mulf %53, %53 : vector<8x1xf32>
      %60 = arith.subf %58, %59 : vector<8x1xf32>
      %cst_29 = arith.constant 9.99999974E-6 : f32
      %61 = vector.broadcast %cst_29 : f32 to vector<8x1xf32>
      %62 = arith.addf %60, %61 : vector<8x1xf32>
      %63 = math.rsqrt %62 : vector<8x1xf32>
      %64 = vector.broadcast %53 : vector<8x1xf32> to vector<8x128xf32>
      %65 = arith.subf %49, %64 : vector<8x128xf32>
      %66 = vector.broadcast %63 : vector<8x1xf32> to vector<8x128xf32>
      %67 = arith.mulf %65, %66 : vector<8x128xf32>
      %68 = vector.broadcast %7 : vector<1x128xf32> to vector<8x128xf32>
      %69 = arith.mulf %67, %68 : vector<8x128xf32>
      %70 = vector.broadcast %8 : vector<1x128xf32> to vector<8x128xf32>
      %71 = arith.addf %69, %70 : vector<8x128xf32>
      %72 = vector.broadcast %17 : i32 to vector<8x1xi32>
      %73 = arith.cmpi sge, %31, %72 : vector<8x1xi32>
      %74 = vector.broadcast %5 : i32 to vector<8x1xi32>
      %75 = arith.cmpi slt, %31, %74 : vector<8x1xi32>
      %76 = arith.andi %73, %75 : vector<8x1xi1>
      %77 = vector.shape_cast %76 : vector<8x1xi1> to vector<8x1xi1>
      %78 = vector.broadcast %77 : vector<8x1xi1> to vector<8x128xi1>
      %79 = arith.select %78, %71, %33 : vector<8x128xi1>, vector<8x128xf32>
      %c0_30 = arith.constant 0 : index
      %c8_31 = arith.constant 8 : index
      %c0_32 = arith.constant 0 : index
      %80 = vector.load %arg7[%c0_30, %c8_31, %c0_32] : memref<1x16x128xf32, #tpu.memory_space<vmem>>, vector<1x8x128xf32>
      %81 = vector.shape_cast %80 : vector<1x8x128xf32> to vector<8x128xf32>
      %82 = vector.shape_cast %79 : vector<8x128xf32> to vector<1x8x128xf32>
      tpu.vector_store %arg7[%c0_30, %c8_31, %c0_32], %82 {strides = array<i32>} : memref<1x16x128xf32, #tpu.memory_space<vmem>>, vector<1x8x128xf32>,
    } else {
    }
    %true_15 = arith.constant true
    %37 = arith.xori %34, %true_15 : i1
    %38 = arith.extui %37 : i1 to i32
    %c0_i32_16 = arith.constant 0 : i32
    %39 = arith.cmpi ne, %38, %c0_i32_16 : i32
    scf.if %39 {
      %c0_17 = arith.constant 0 : index
      %c8 = arith.constant 8 : index
      %c0_18 = arith.constant 0 : index
      %40 = vector.load %arg7[%c0_17, %c8, %c0_18] : memref<1x16x128xf32, #tpu.memory_space<vmem>>, vector<1x8x128xf32>
      %41 = vector.shape_cast %40 : vector<1x8x128xf32> to vector<8x128xf32>
      %42 = vector.shape_cast %33 : vector<8x128xf32> to vector<1x8x128xf32>
      tpu.vector_store %arg7[%c0_17, %c8, %c0_18], %42 {strides = array<i32>} : memref<1x16x128xf32, #tpu.memory_space<vmem>>, vector<1x8x128xf32>,
    } else {
    }
    return
  }
  func.func @transform_0(%arg0: i32, %arg1: i32, %arg2: memref<4xi32, #tpu.memory_space<smem>>, %arg3: memref<4xi32, #tpu.memory_space<smem>>) -> (i32, i32) {
    %c0_i32 = arith.constant 0 : i32
    %c0_i32_0 = arith.constant 0 : i32
    %c0_i32_1 = arith.constant 0 : i32
    return %c0_i32, %c0_i32_0 : i32, i32
  }
  func.func @transform_1(%arg0: i32, %arg1: i32, %arg2: memref<4xi32, #tpu.memory_space<smem>>, %arg3: memref<4xi32, #tpu.memory_space<smem>>) -> (i32, i32) {
    %c0_i32 = arith.constant 0 : i32
    %c0_i32_0 = arith.constant 0 : i32
    %c0_i32_1 = arith.constant 0 : i32
    return %c0_i32, %c0_i32_0 : i32, i32
  }
  func.func @transform_3(%arg0: i32, %arg1: i32, %arg2: memref<4xi32, #tpu.memory_space<smem>>, %arg3: memref<4xi32, #tpu.memory_space<smem>>) -> (i32, i32, i32) {
    %c0_i32 = arith.constant 0 : i32
    %c0_i32_0 = arith.constant 0 : i32
    return %arg0, %arg1, %c0_i32 : i32, i32, i32
  }
}

</mosaic_0001>

<bundles_post_ra>
// kernel: tpu_custom_call.1
= control target key start
LH: loop header
LB: loop body
LE: loop exit
PB: predicated region body
PF: predicated region fallthrough
CT: control target
= control target key end

     0   :  { %s1477_s0 = inlined_call_operand.hbm [shape: s32[4], index: 0, kind: input, shape index: {}]   ;;  %s1478_s2 = inlined_call_operand.hbm [shape: f32[8,128], index: 2, kind: input, shape index: {}]   ;;  %s1479_s3 = inlined_call_operand.hbm [shape: f32[64,128], index: 3, kind: input, shape index: {}]   ;;  %s1480_s4 = inlined_call_operand.hbm [shape: f32[53,64], index: 4, kind: input, shape index: {}]   ;;  %s1481_s5 = inlined_call_operand.hbm [shape: f32[2,32,128], index: 5, kind: output, shape index: {}]   ;;  %s1482_s1 = inlined_call_operand.vmem [shape: s32[4], index: 1, kind: input, shape index: {}]  }
   0x1   :  { %s851_s20 = scalar_lea.hbm %s1477_s0, 16 }
   0x2   :  { %p852_p0 = scmp.ne.s32.totalorder %s1477_s0, %s851_s20  ;;  %p855_p1 = scmp.lt.u32.totalorder %s851_s20, %s1477_s0 }
   0x4   :  { %p857_p2 = pnand %p855_p1, %p852_p0 }
   0x6   :  { %860 = shalt.err (!%p857_p2)  }
   0x7   :  { %s1096_s25 = smov [#allocation5]   ;;  %s12_s30 = sshll.u32 %s1482_s1, 4  ;;  %s13_s30 = int_to_ptr.vmem [resolvable:$true] %s12_s30 }
   0x8   :  { %11 = dma.hbm_to_smem %s1477_s0, 16, %s1096_s25, [#allocation4] }
   0x9   :  { %s861_s6 = scalar_lea.vmem %s13_s30, 16  ;;  %p866_p4 = scmp.lt.s32.totalorder %s13_s30, %s13_s30 }
   0xa   :  { %p862_p3 = scmp.ne.s32.totalorder %s13_s30, %s861_s6  ;;  %p867_p5 = scmp.lt.s32.totalorder %s861_s6, %s861_s6 }
   0xc   :  { %p868_p6 = por %p867_p5, %p866_p4 }
   0xe   :  { %p869_p7 = pnand %p868_p6, %p862_p3 }
  0x10   :  { %872 = shalt.err (!%p869_p7)  }
  0x11   :  { %s1097_s7 = smov [#allocation6]  }
  0x12   :  { %15 = dma.vmem_to_smem %s13_s30, 16, %s1097_s7, [#allocation4] }
  0x13   :  { %1046 = dma.done.wait [#allocation4], 32 }
  0x14   :  { %1047 = vsyncadd [#allocation4], 4294967264 }
  0x15   :  { %17 = sfence }
  0x16   :  { %18 = vsyncpa [#allocation8], 0 }
  0x17   :  { %19 = vsyncpa [#allocation11], 0 }
  0x18   :  { %20 = vsyncpa [#allocation9], 0 }
  0x19   :  { %22 = vsyncpa [#allocation9 + $0x1], 0  ;;  %s1158_s0 = smov 0   ;;  %s1160_s1 = smov 0  }
  0x1a   :  { %s1162_s8 = smov 0   ;;  %s1164_s9 = smov 0  }
  0x1b   :  { %s1166_s10 = smov 0   ;;  %s1168_s11 = smov 0  }
  0x1c   :  { %s1170_s12 = smov 0   ;;  %s1172_s13 = smov 0  }
  0x1d LB: > { %s626_s14 = sadd.s32 4294967295, %s1094_s13   ;;  %s627_s15 = sadd.s32 4294967294, %s1094_s13   ;;  %s1094_s13 = sphi %s1172_s13, %s28_s13   ;;  %s1090_s12 = sphi %s1170_s12, %s1509_s12   ;;  %s1086_s11 = sphi %s1168_s11, %s1508_s11   ;;  %s1082_s10 = sphi %s1166_s10, %s1507_s10   ;;  %s1078_s9 = sphi %s1164_s9, %s1506_s9   ;;  %s1074_s8 = sphi %s1162_s8, %s1505_s8   ;;  %s1070_s1 = sphi %s1160_s1, %s1504_s1   ;;  %s1066_s0 = sphi %s1158_s0, %s1503_s0  }
  0x1e   : > { %s37_s16 = sadd.s32 1, %s1086_s11  ;;  %s40_s17 = sadd.s32 1, %s1090_s12 }
  0x1f   : > { %p38_p8 = scmp.ge.s32.totalorder %s37_s16, 2  ;;  %s91_s18 = sadd.s32 1, %s1074_s8 }
  0x20   : > { %p101_p9 = scmp.ne.s32.totalorder %s1074_s8, %s1070_s1  ;;  %p102_p10 = scmp.eq.s32.totalorder %s626_s14, 3 }
  0x21   : > { %s1511_s16 = smov (%p38_p8, %s37_s16), 0  ;;  %s1513_s17 = smov (!%p38_p8, %s40_s17), %s1090_s12 }
  0x22   : > { %s87_s19 = ssub.s32 %s1086_s11, %s1511_s16  ;;  %p1210_p11 = por %p102_p10, %p101_p9 }
  0x23   : > { %p42_p12 = scmp.ge.s32.totalorder %s1513_s17, 2  ;;  %p107_p13 = scmp.ne.s32.totalorder %s1070_s1, %s1066_s0 }
  0x24   : > { %s1489_s20 = scalar_select %p1210_p11, 1, 0 }
  0x25   : > { %p108_p0 = scmp.eq.s32.totalorder %s627_s15, 3  ;;  %p628_p1 = scmp.ge.s32.totalorder %s1094_s13, 1 }
  0x26   : > { %s1515_s17 = smov (%p42_p12, %s1513_s17), 0  ;;  %p115_p3 = scmp.lt.s32.totalorder %s1094_s13, 5 }
  0x27   : > { %p1219_p2 = por %p108_p0, %p107_p13  ;;  %s86_s22 = ssub.s32 %s1090_s12, %s1515_s17 }
  0x28   : > { %s88_s23 = sor.u32 %s87_s19, %s86_s22  ;;  %p1226_p4 = pnand %p628_p1, %p115_p3 }
  0x29   : > { %s1490_s21 = scalar_select %p1219_p2, 1, 0 }
  0x2a   : > { %s1491_s24 = scalar_select %p1226_p4, 1, 0 }
  0x2b   : > { %p89_p5 = scmp.eq.s32.totalorder %s88_s23, 0  ;;  %p1230_p6 = scmp.eq.s32.totalorder %s626_s14, 0 }
  0x2c   : > { %p749_p7 = pneg %p1226_p4  ;;  %s1098_s27 = smov [#allocation7]  }
  0x2d   : > { %s1492_s25 = scalar_select %p1230_p6, 1, 0 }
  0x2e   : > { %s1237_s26 = scalar_select %p89_p5, %s1074_s8, %s91_s18  }
  0x2f   : > { %s128_s28 = sshll.u32 %s1098_s27, 4  ;;  %p1241_p8 = pnand %p1230_p6, %p749_p7  ;;  %s129_s28 = int_to_ptr.vmem [resolvable:$true] %s128_s28 }
  0x30   : > { %s1099_s30 = smov [#allocation10]   ;;  %s873_s15 = scalar_lea.hbm %s1478_s2, 128 }
  0x31   : > { %s138_s6 = sshll.u32 %s1099_s30, 4  ;;  %p874_p9 = scmp.ne.s32.totalorder %s1478_s2, %s873_s15  ;;  %s139_s6 = int_to_ptr.vmem [resolvable:$true] %s138_s6 }
  0x32   : > { %p875_p10 = pneg %p1241_p8  ;;  %p880_p0 = scmp.lt.u32.totalorder %s873_s15, %s1478_s2 }
  0x34   : > { %p876_p12 = pnand %p875_p10, %p874_p9 }
  0x36   : > { %p877_p13 = pneg %p876_p12 }
  0x38   : > { %p882_p1 = pnand %p880_p0, %p877_p13 }
  0x3a   : > { %885 = shalt.err (!%p882_p1)
}
  0x3b   : > { %s886_s27 = scalar_lea.vmem %s129_s28, 128  ;;  %p894_p2 = scmp.lt.s32.totalorder %s129_s28, %s129_s28 }
  0x3c   : > { %p887_p3 = scmp.ne.s32.totalorder %s129_s28, %s886_s27  ;;  %p895_p11 = scmp.lt.s32.totalorder %s886_s27, %s886_s27 }
  0x3e   : > { %p889_p5 = pnand %p887_p3, %p875_p10  ;;  %p896_p6 = por %p895_p11, %p894_p2 }
  0x40   : > { %p890_p7 = pneg %p889_p5 }
  0x42   : > { %p897_p4 = pnand %p896_p6, %p890_p7 }
  0x44   : > { %900 = shalt.err (!%p897_p4)
}
  0x45   : > { %752 = dma.hbm_to_vmem [thread:$0]  (!%p1241_p8), %s1478_s2, 128, %s129_s28, [#allocation8]  }
  0x46   : > { %s901_s19 = scalar_lea.hbm %s1479_s3, 1024 }
  0x47   : > { %p902_p9 = scmp.ne.s32.totalorder %s1479_s3, %s901_s19  ;;  %p908_p4 = scmp.lt.u32.totalorder %s901_s19, %s1479_s3 }
  0x49   : > { %p904_p11 = pnand %p902_p9, %p875_p10 }
  0x4b   : > { %p905_p2 = pneg %p904_p11 }
  0x4d   : > { %p910_p6 = pnand %p908_p4, %p905_p2 }
  0x4f   : > { %913 = shalt.err (!%p910_p6)
}
  0x50   : > { %s914_s28 = scalar_lea.vmem %s139_s6, 1024  ;;  %p922_p1 = scmp.lt.s32.totalorder %s139_s6, %s139_s6 }
  0x51   : > { %p915_p12 = scmp.ne.s32.totalorder %s139_s6, %s914_s28  ;;  %p923_p3 = scmp.lt.s32.totalorder %s914_s28, %s914_s28 }
  0x53   : > { %p917_p13 = pnand %p915_p12, %p875_p10  ;;  %p924_p5 = por %p923_p3, %p922_p1 }
  0x55   : > { %p918_p0 = pneg %p917_p13 }
  0x57   : > { %p925_p7 = pnand %p924_p5, %p918_p0 }
  0x59   : > { %928 = shalt.err (!%p925_p7)
}
  0x5a   : > { %s1100_s30 = smov 128   ;;  %s1101_s7 = smov 8  }
  0x5b   : > { %755 = dma.hbm_to_vmem [thread:$0]  (!%p1241_p8), %s1479_s3, 1024, %s139_s6, [#allocation11], %s1100_s30, %s1100_s30, %s1101_s7  }
  0x5c   : > { %p1494_p9 = scmp.ne.s32.totalorder %s1491_s24, 0 }
  0x5d   : > { %p1495_p11 = scmp.ne.s32.totalorder (!%p1494_p9), %s1492_s25, 0 }
  0x5e   : > { %154 = sbr.rel (%p1494_p9) target bundleno = 1031 (0x407), region = 28 }
  0x65   : > { %1049 = dma.done.wait (%p1495_p11), [#allocation8], 128  }
  0x66   : > { %1051 = vsyncadd (%p1495_p11), [#allocation8], 4294967168 }
  0x67   : > { %1053 = dma.done.wait (%p1495_p11), [#allocation11], 1024  }
  0x68   : > { %1055 = vsyncadd (%p1495_p11), [#allocation11], 4294966272  ;;  %s1487_s29 = sand.u32 1, %s1070_s1   ;;  %s635_s6 = sshll.u32 %s1082_s10, 1  ;;  %v223_v0 = vlaneseq  ;;  %v1308_v2 = vld [vmem:[#allocation7] sm:$0x1] }
  0x69   : > { %s1301_s24 = sshll.u32 %s1487_s29, 4  ;;  %s177_s19 = sadd.s32 %s1078_s9, %s635_s6  ;;  %v1310_v3 = vld [vmem:[#allocation7 + $0x1] sm:$0x1]  ;;  %v1312_v4 = vld [vmem:[#allocation7 + $0x2] ss:$0 sm:$0xff] }
  0x6a   : > { %s178_s22 = sld [smem:[#allocation5 + %s177_s19]]  ;;  %v1304_v1 = vshrl.u32 %v223_v0, 7  ;;  %s1102_s25 = smov [#allocation2]   ;;  %v1318_v5 = vld [vmem:[#allocation7 + $0x3] sm:$0x1] }
  0x6b   : > { %s1306_s18 = sld [smem:[#allocation6 + %s177_s19]]  ;;  %s197_s23 = sshll.u32 %s1102_s25, 4  ;;  %s1314_s23 = int_to_ptr.vmem [resolvable:$true] %s197_s23 }
  0x6c   : > { %s1103_s27 = smov [#allocation2 + $0x8]  }
  0x6d   : > { %s217_s28 = sshll.u32 %s1103_s27, 4  ;;  %s1316_s28 = int_to_ptr.vmem [resolvable:$true] %s217_s28 }
  0x70   : > { %s637_s30 = sshll.u32 %s178_s22, 4  ;;  %s933_s22 = scalar_lea.hbm %s1480_s4, 896 }
  0x71   : > { %p1488_p2 = scmp.gt.s32.totalorder %s1306_s18, 0  ;;  %s189_s15 = scalar_lea.hbm %s1480_s4, %s637_s30 }
  0x72   : > { %s1327_s6 = scalar_lea.hbm %s189_s15, 128  ;;  %p934_p0 = scmp.lt.u32.totalorder %s189_s15, %s1480_s4 }
  0x73   : > { %p930_p6 = scmp.ne.s32.totalorder %s189_s15, %s1327_s6  ;;  %p935_p1 = scmp.lt.u32.totalorder %s933_s22, %s1327_s6 }
  0x74   : > { %p937_p5 = scmp.lt.u32.totalorder %s1327_s6, %s189_s15 }
  0x75   : > { %p931_p12 = pnand %p930_p6, %p1488_p2  ;;  %p936_p3 = por %p935_p1, %p934_p0 }
  0x77   : > { %p932_p13 = pneg %p931_p12  ;;  %p938_p7 = por %p937_p5, %p936_p3 }
  0x79   : > { %p939_p9 = pnand %p938_p7, %p932_p13 }
  0x7b   : > { %942 = shalt.err (!%p939_p9)  }
  0x7c   : > { %s943_s30 = scalar_lea.vmem %s1314_s23, 128  ;;  %s949_s7 = scalar_lea.vmem %s1314_s23, 256 }
  0x7d   : > { %p944_p11 = scmp.ne.s32.totalorder %s1314_s23, %s943_s30  ;;  %p950_p4 = scmp.lt.s32.totalorder %s1314_s23, %s1314_s23 }
  0x7e   : > { %p951_p10 = scmp.lt.s32.totalorder %s949_s7, %s943_s30 }
  0x7f   : > { %p945_p6 = pnand %p944_p11, %p1488_p2 }
  0x80   : > { %p952_p8 = por %p951_p10, %p950_p4 }
  0x81   : > { %p946_p12 = pneg %p945_p6 }
  0x83   : > { %p953_p0 = pnand %p952_p8, %p946_p12 }
  0x85   : > { %956 = shalt.err (!%p953_p0)  }
  0x86   : > { %744 = dma.hbm_to_vmem [thread:$0]  (%p1488_p2), %s189_s15, 128, %s1314_s23, [#allocation3] }
  0x87   : > { %p765_p13 = scmp.gt.s32.totalorder %s1306_s18, 8  ;;  %p1496_p1 = scmp.eq.s32.totalorder %s1078_s9, 0 }
  0x88   : > { %s985_s14 = scalar_lea.hbm %s189_s15, 256  ;;  %p962_p4 = scmp.lt.u32.totalorder %s1327_s6, %s1480_s4 }
  0x89   : > { %s1353_s29 = scalar_select %p1496_p1, 1, 0 }
  0x8a   : > { %p958_p3 = scmp.ne.s32.totalorder %s1327_s6, %s985_s14  ;;  %p963_p5 = scmp.lt.u32.totalorder %s933_s22, %s985_s14 }
  0x8b   : > { %p965_p9 = scmp.lt.u32.totalorder %s985_s14, %s1327_s6 }
  0x8c   : > { %p959_p10 = pnand %p958_p3, %p765_p13  ;;  %p964_p7 = por %p963_p5, %p962_p4 }
  0x8e   : > { %p960_p8 = pneg %p959_p10  ;;  %p966_p11 = por %p965_p9, %p964_p7 }
  0x90   : > { %p967_p6 = pnand %p966_p11, %p960_p8 }
  0x92   : > { %970 = shalt.err (!%p967_p6)  }
  0x93   : > { %s971_s15 = scalar_lea.vmem %s1316_s28, 128  ;;  %p978_p3 = scmp.lt.s32.totalorder %s1316_s28, %s1314_s23 }
  0x94   : > { %p972_p12 = scmp.ne.s32.totalorder %s1316_s28, %s971_s15  ;;  %p979_p10 = scmp.lt.s32.totalorder %s949_s7, %s971_s15 }
  0x96   : > { %p973_p0 = pnand %p972_p12, %p765_p13  ;;  %p980_p2 = por %p979_p10, %p978_p3 }
  0x98   : > { %p974_p1 = pneg %p973_p0 }
  0x9a   : > { %p981_p4 = pnand %p980_p2, %p974_p1 }
  0x9c   : > { %984 = shalt.err (!%p981_p4)  }
  0x9d   : > { %746 = dma.hbm_to_vmem [thread:$0]  (%p765_p13), %s1327_s6, 128, %s1316_s28, [#allocation3 + $0x1] }
  0x9e   : > { %s1374_s22 = scalar_lea.vmem [#allocation12], %s1301_s24  ;;  %p1497_p8 = scmp.le.s32.totalorder %s1306_s18, 0 }
  0xa0   : > { %231 = sbr.rel (%p1497_p8) target bundleno = 573 (0x23d), region = 56 }
  0xa7   : > { %1056 = dma.done.wait [#allocation3], 128 }
  0xa8   : > { %1057 = vsyncadd [#allocation3], 4294967168  ;;  %v1104_v6 = vmov 0.0|0.0   ;;  %vm1105_vm0 = vmmov 0   ;;  %v1106_v7 = vmov 0.0   ;;  %v236_v8 = vld [vmem:[#allocation10] sm:$0xff]  ;;  %v342_v34 = vstv %s1353_s29 }
  0xa9   : > { %711 = vmatprep.subr.bf16.mxu0 %v1104_v6  ;;  %689 = vmatprep.mubr.msk.f32.mxu0 %vm1105_vm0, %v1106_v7  ;;  %v237_v9 = vld [vmem:[#allocation10 + $0x8] sm:$0xff]  ;;  %v238_v10 = vld [vmem:[#allocation10 + $0x10] sm:$0xff]  ;;  %v239_v12 = vld [vmem:[#allocation10 + $0x18] sm:$0xff]  ;;  %vm248_vm1 = vcmask 523264   ;;  %v246_v21 = vsub.s32 0, %v1304_v1  ;;  %v344_v35 = vstv %s1306_s18  ;;  %vm343_vm2 = vcmp.ge.s32.totalorder %v1304_v1, %v342_v34 }
  0xaa   : > { %v712_v11 = vpack.c.bf16 %v237_v9, %v236_v8  ;;  %v715_v13 = vpack.c.bf16 %v239_v12, %v238_v10  ;;  %v240_v14 = vld [vmem:[#allocation10 + $0x20] sm:$0xff]  ;;  %v241_v15 = vld [vmem:[#allocation10 + $0x28] sm:$0xff]  ;;  %v242_v17 = vld [vmem:[#allocation10 + $0x30] sm:$0xff]  ;;  %vm345_vm3 = vcmp.lt.s32.totalorder %v1304_v1, %v344_v35  ;;  %vm350_vm4 = vcmp.lt.s32.totalorder %v1304_v1, 1 }
  0xab   : > { %v718_v16 = vpack.c.bf16 %v241_v15, %v240_v14  ;;  %v243_v18 = vld [vmem:[#allocation10 + $0x38] sm:$0xff]  ;;  %v235_v20 = vld [vmem:[#allocation2] sm:$0xff]  ;;  %v247_v22 = vrot.slane %v1308_v2, %v246_v21  ;;  %v339_v36 = vrot.slane %v1310_v3, %v246_v21  ;;  %vm351_vm5 = vcmp.eq.s32.totalorder %v342_v34, 1  ;;  %vm346_vm6 = vmand %vm343_vm2, %vm345_vm3 }
  0xac   : > { %713 = vmatpush3.bf16.msra.mxu0 %v712_v11  ;;  %v721_v19 = vpack.c.bf16 %v243_v18, %v242_v17  ;;  %v358_v41 = vrot.slane %v1318_v5, %v246_v21  ;;  %vm352_vm7 = vmand %vm350_vm4, %vm351_vm5 }
  0xad   : > { %714 = vmatprep.subr.bf16.mxu0 %v1104_v6 }
  0xb0   : > { %716 = vmatpush3.bf16.msra.mxu0 %v715_v13 }
  0xb1   : > { %717 = vmatprep.subr.bf16.mxu0 %v1104_v6 }
  0xb4   : > { %719 = vmatpush3.bf16.msra.mxu0 %v718_v16 }
  0xb5   : > { %720 = vmatprep.subr.bf16.mxu0 %v1104_v6 }
  0xb8   : > { %722 = vmatpush3.bf16.msra.mxu0 %v721_v19 }
  0xbb   : > { %690 = vmatmul.mubr.msk.f32.vlgmr.msra.gmra.mrb[0].mxu0 %vm248_vm1, %v235_v20 }
 0x18e   : > { %v318_v23 = vpop.f32.mrb[0].mxu0 }
 0x18f   : > { %v319_v24 = vadd.f32 %v318_v23, %v247_v22  ;;  %v691_v25 = vpop.f32.mrb[1].mxu0 }
 0x191   : > { %322 = vadd.xlane.f32.xlu0 %v319_v24  ;;  %v326_v26 = vmul.f32 %v319_v24, %v319_v24 }
 0x195   : > { %327 = vadd.xlane.f32.xlu0 %v326_v26 }
 0x21e   : > { %v323_v27 = vpop.xlane.xlu0 %322 }
 0x21f   : > { %v325_v28 = vmul.f32 0.0078125, %v323_v27 }
 0x221   : > { %v330_v30 = vmul.f32 %v325_v28, %v325_v28  ;;  %v334_v37 = vsub.f32 %v319_v24, %v325_v28 }
 0x222   : > { %v328_v29 = vpop.xlane.xlu0 %327 }
 0x223   : > { %v329_v31 = vmul.f32 0.0078125, %v328_v29 }
 0x225   : > { %v331_v32 = vsub.f32 %v329_v31, %v330_v30 }
 0x227   : > { %v332_v33 = vadd.f32 1e-05, %v331_v32 }
 0x229   : > { %847 = vrsqrt.f32 %v332_v33 }
 0x233   : > { %v848_v38 = vpop.eup %847 }
 0x234   : > { %v335_v39 = vmul.f32 %v848_v38, %v334_v37 }
 0x236   : > { %v340_v40 = vmul.f32 %v339_v36, %v335_v39 }
 0x238   : > { %v341_v42 = vadd.f32 %v1312_v4, %v340_v40 }
 0x23a   : > { %v349_v43 = vsel %vm346_vm6, %v341_v42, %v1312_v4 }
 0x23b   : > { %v359_v44 = vsel %vm352_vm7, %v358_v41, %v349_v43 }
 0x23c   : > { %360 = vst [vmem:[%s1374_s22] sm:$0xff] %v359_v44 }
 0x23d PF: > { %p1498_p2 = scmp.gt.s32.totalorder %s1306_s18, 0 }
 0x23e   : > { %vm365_vm8 = vcmp.lt.s32.totalorder (!%p1498_p2), %v1304_v1, 1  ;;  %v366_v45 = vstv (!%p1498_p2), %s1353_s29  ;;  %v373_v46 = vsub.s32 (!%p1498_p2), 0, %v1304_v1 }
 0x23f   : > { %364 = sbr.rel (%p1498_p2) target bundleno = 582 (0x246), region = 60  ;;  %vm367_vm9 = vcmp.eq.s32.totalorder (!%p1498_p2), %v366_v45, 1 }
 0x240   : > { %vm368_vm10 = vmand (!%p1498_p2), %vm365_vm8, %vm367_vm9  ;;  %v374_v47 = vrot.slane (!%p1498_p2), %v1318_v5, %v373_v46 }
 0x242   : > { %v375_v48 = vsel (!%p1498_p2), %vm368_vm10, %v374_v47, %v1312_v4 }
 0x243   : > { %376 = vst [vmem:[%s1374_s22] sm:$0xff] (!%p1498_p2), %v375_v48 }
 0x246 PF: > { %v377_v49 = vadd.s32 8, %v1304_v1  ;;  %p1499_p5 = scmp.le.s32.totalorder %s1306_s18, 8 }
 0x248   : > { %380 = sbr.rel (%p1499_p5) target bundleno = 996 (0x3e4), region = 64 }
 0x24f   : > { %1058 = dma.done.wait [#allocation3 + $0x1], 128 }
 0x250   : > { %1059 = vsyncadd [#allocation3 + $0x1], 4294967168  ;;  %v1107_v50 = vmov 0.0|0.0   ;;  %vm1108_vm11 = vmmov 0   ;;  %v1109_v51 = vmov 0.0   ;;  %v386_v52 = vld [vmem:[#allocation10] sm:$0xff]  ;;  %v494_v18 = vstv %s1306_s18 }
 0x251   : > { %723 = vmatprep.subr.bf16.mxu0 %v1107_v50  ;;  %708 = vmatprep.mubr.msk.f32.mxu0 %vm1108_vm11, %v1109_v51  ;;  %v387_v53 = vld [vmem:[#allocation10 + $0x8] sm:$0xff]  ;;  %v388_v54 = vld [vmem:[#allocation10 + $0x10] sm:$0xff]  ;;  %v389_v56 = vld [vmem:[#allocation10 + $0x18] sm:$0xff]  ;;  %vm398_vm12 = vcmask 523264   ;;  %v396_v5 = vsub.s32 0, %v1304_v1  ;;  %v492_v1 = vstv %s1353_s29  ;;  %vm495_vm14 = vcmp.lt.s32.totalorder %v377_v49, %v494_v18 }
 0x252   : > { %v724_v55 = vpack.c.bf16 %v387_v53, %v386_v52  ;;  %v727_v57 = vpack.c.bf16 %v389_v56, %v388_v54  ;;  %v390_v58 = vld [vmem:[#allocation10 + $0x20] sm:$0xff]  ;;  %v391_v59 = vld [vmem:[#allocation10 + $0x28] sm:$0xff]  ;;  %v392_v61 = vld [vmem:[#allocation10 + $0x30] sm:$0xff]  ;;  %vm493_vm13 = vcmp.ge.s32.totalorder %v377_v49, %v492_v1 }
 0x253   : > { %v730_v60 = vpack.c.bf16 %v391_v59, %v390_v58  ;;  %v393_v62 = vld [vmem:[#allocation10 + $0x38] sm:$0xff]  ;;  %v385_v0 = vld [vmem:[#allocation2 + $0x8] sm:$0xff]  ;;  %v397_v6 = vrot.slane %v1308_v2, %v396_v5  ;;  %v489_v2 = vrot.slane %v1310_v3, %v396_v5  ;;  %vm496_vm15 = vmand %vm493_vm13, %vm495_vm14 }
 0x254   : > { %725 = vmatpush3.bf16.msra.mxu0 %v724_v55  ;;  %v733_v63 = vpack.c.bf16 %v393_v62, %v392_v61 }
 0x255   : > { %726 = vmatprep.subr.bf16.mxu0 %v1107_v50 }
 0x258   : > { %728 = vmatpush3.bf16.msra.mxu0 %v727_v57 }
 0x259   : > { %729 = vmatprep.subr.bf16.mxu0 %v1107_v50 }
 0x25c   : > { %731 = vmatpush3.bf16.msra.mxu0 %v730_v60 }
 0x25d   : > { %732 = vmatprep.subr.bf16.mxu0 %v1107_v50 }
 0x260   : > { %734 = vmatpush3.bf16.msra.mxu0 %v733_v63 }
 0x263   : > { %709 = vmatmul.mubr.msk.f32.vlgmr.msra.gmra.mrb[0].mxu0 %vm398_vm12, %v385_v0 }
 0x336   : > { %v468_v7 = vpop.f32.mrb[0].mxu0 }
 0x337   : > { %v469_v8 = vadd.f32 %v468_v7, %v397_v6  ;;  %v710_v9 = vpop.f32.mrb[1].mxu0 }
 0x339   : > { %472 = vadd.xlane.f32.xlu0 %v469_v8  ;;  %v476_v10 = vmul.f32 %v469_v8, %v469_v8 }
 0x33d   : > { %477 = vadd.xlane.f32.xlu0 %v476_v10 }
 0x3c6   : > { %v473_v11 = vpop.xlane.xlu0 %472 }
 0x3c7   : > { %v475_v12 = vmul.f32 0.0078125, %v473_v11 }
 0x3c9   : > { %v480_v14 = vmul.f32 %v475_v12, %v475_v12  ;;  %v484_v19 = vsub.f32 %v469_v8, %v475_v12 }
 0x3ca   : > { %v478_v13 = vpop.xlane.xlu0 %477 }
 0x3cb   : > { %v479_v15 = vmul.f32 0.0078125, %v478_v13 }
 0x3cd   : > { %v481_v16 = vsub.f32 %v479_v15, %v480_v14 }
 0x3cf   : > { %v482_v17 = vadd.f32 1e-05, %v481_v16 }
 0x3d1   : > { %849 = vrsqrt.f32 %v482_v17 }
 0x3db   : > { %v850_v20 = vpop.eup %849 }
 0x3dc   : > { %v485_v21 = vmul.f32 %v850_v20, %v484_v19 }
 0x3de   : > { %v490_v22 = vmul.f32 %v489_v2, %v485_v21 }
 0x3e0   : > { %v491_v23 = vadd.f32 %v1312_v4, %v490_v22 }
 0x3e2   : > { %v499_v24 = vsel %vm496_vm15, %v491_v23, %v1312_v4 }
 0x3e3   : > { %500 = vst [vmem:[%s1374_s22 + $0x8] sm:$0xff] %v499_v24 }
 0x3e4 PF: > { %504 = sbr.rel (%p765_p13) target bundleno = 1003 (0x3eb), region = 68  ;;  %505 = vst [vmem:[%s1374_s22 + $0x8] sm:$0xff] (!%p765_p13), %v1312_v4 }
 0x3eb PF: > { %s648_s24 = sshll.u32 %s1078_s9, 1  ;;  %s649_s23 = sshll.u32 %s1082_s10, 2 }
 0x3ec   : > { %s522_s28 = sshll.u32 %s1374_s22, 4  ;;  %s519_s6 = sadd.s32 %s649_s23, %s648_s24  ;;  %s1416_s28 = int_to_ptr.vmem [resolvable:$true] %s522_s28 }
 0x3ed   : > { %s650_s18 = sshll.u32 %s519_s6, 7  ;;  %s1500_s29 = sand.u32 1, %s1070_s1  }
 0x3ee   : > { %s1421_s7 = scalar_lea.hbm %s1481_s5, %s650_s18  ;;  %s1425_s14 = scalar_lea.sflag [#allocation9], %s1500_s29 }
 0x3ef   : > { %s986_s19 = scalar_lea.vmem %s1416_s28, 256  ;;  %p1501_p7 = scmp.ne.s32.totalorder %s1489_s20, 0 }
 0x3f0   : > { %p987_p13 = scmp.ne.s32.totalorder %s1416_s28, %s986_s19  ;;  %s1110_s9 = smov [#allocation12]  }
 0x3f1   : > { %s990_s10 = sshll.u32 %s1110_s9, 4  ;;  %s991_s10 = int_to_ptr.vmem [resolvable:$false] %s990_s10 }
 0x3f2   : > { %p988_p9 = pnand %p987_p13, %p1501_p7  ;;  %s992_s25 = scalar_lea.vmem %s991_s10, 512 }
 0x3f3   : > { %p993_p6 = scmp.lt.s32.totalorder %s1416_s28, %s991_s10  ;;  %p994_p12 = scmp.lt.s32.totalorder %s992_s25, %s986_s19 }
 0x3f4   : > { %p989_p11 = pneg %p988_p9 }
 0x3f5   : > { %p995_p0 = por %p994_p12, %p993_p6 }
 0x3f7   : > { %p996_p1 = pnand %p995_p0, %p989_p11 }
 0x3f9   : > { %999 = shalt.err (!%p996_p1)
}
 0x3fa   : > { %s1000_s15 = scalar_lea.hbm %s1421_s7, 256  ;;  %s1004_s23 = scalar_lea.hbm %s1481_s5, 1024 }
 0x3fb   : > { %p1001_p3 = scmp.ne.s32.totalorder %s1421_s7, %s1000_s15  ;;  %p1005_p8 = scmp.lt.u32.totalorder %s1421_s7, %s1481_s5 }
 0x3fc   : > { %p1006_p2 = scmp.lt.u32.totalorder %s1004_s23, %s1000_s15  ;;  %p1008_p13 = scmp.lt.u32.totalorder %s1000_s15, %s1421_s7 }
 0x3fd   : > { %p1002_p10 = pnand %p1001_p3, %p1501_p7 }
 0x3fe   : > { %p1007_p5 = por %p1006_p2, %p1005_p8 }
 0x3ff   : > { %p1003_p4 = pneg %p1002_p10 }
 0x400   : > { %p1009_p9 = por %p1008_p13, %p1007_p5 }
 0x402   : > { %p1010_p11 = pnand %p1009_p9, %p1003_p4 }
 0x404   : > { %1013 = shalt.err (!%p1010_p11)
}
 0x405   : > { %s1111_s27 = smov 128   ;;  %s1112_s30 = smov 8  }
 0x406   : > { %747 = dma.vmem_to_hbm [thread:$0]  (%p1501_p7), %s1416_s28, 256, %s1421_s7, %s1425_s14, %s1111_s27, %s1111_s27, %s1112_s30  }
 0x407 PF: > { %p766_p6 = scmp.ge.s32.totalorder %s1094_s13, 2  ;;  %s537_s29 = sand.u32 1, %s1066_s0  }
 0x408   : > { %p1502_p12 = scmp.ne.s32.totalorder %s1490_s21, 0  ;;  %s538_s19 = scalar_lea.sflag [#allocation9], %s537_s29 }
 0x40a   : > { %p757_p0 = pnand %p766_p6, %p1502_p12 }
 0x40c   : > { %1061 = dma.done.wait (!%p757_p0), %s538_s19, 256  }
 0x40d   : > { %1063 = vsyncadd (!%p757_p0), %s538_s19, 4294967040  ;;  %s28_s13 = sadd.s32 1, %s1094_s13   ;;  %s1503_s0 = smov %s1070_s1 }
 0x40e   : > { %p25_p1 = scmp.ge.s32.totalorder %s28_s13, 6   ;;  %s1504_s1 = smov %s1074_s8 }
 0x40f   : > { %s1505_s8 = smov %s1237_s26  ;;  %s1506_s9 = smov %s1086_s11 }
 0x410   : > { %s1507_s10 = smov %s1090_s12  ;;  %s1508_s11 = smov %s1511_s16 }
 0x411   : > { %s1509_s12 = smov %s1515_s17  ;;  %27 = sbr.rel (!%p25_p1) target bundleno = 29 (0x1d), region = 107 }
 0x418   :  { %543 = vsyncpa [#allocation8], 1 }
 0x419   :  { %545 = vsyncpa [#allocation8 + $0x1], 1 }
 0x41a   :  { %546 = vsyncpa [#allocation11], 1 }
 0x41b   :  { %547 = vsyncpa [#allocation9], 1 }
 0x41c   :  { %549 = vsyncpa [#allocation9 + $0x1], 1 }
 0x41d   :  { %550 = vsyncmov [#allocation3] }
 0x420   :  { %s551_s20 = vpop.sfrf %550 }
 0x421   :  { %p653_p7 = scmp.ne.s32.totalorder %s551_s20, 0 }
 0x423   :  { %555 = shalt.err (%p653_p7)  }
 0x424   :  { %557 = vsyncmov [#allocation3 + $0x1] }
 0x427   :  { %s558_s21 = vpop.sfrf %557 }
 0x428   :  { %p654_p3 = scmp.ne.s32.totalorder %s558_s21, 0 }
 0x42a   :  { %562 = shalt.err (%p654_p3)  }

// kernel: tpu_custom_call.1
= control target key start
LH: loop header
LB: loop body
LE: loop exit
PB: predicated region body
PF: predicated region fallthrough
CT: control target
= control target key end

     0   :  { %s1477_s0 = inlined_call_operand.hbm [shape: s32[4], index: 0, kind: input, shape index: {}]   ;;  %s1478_s2 = inlined_call_operand.hbm [shape: f32[8,128], index: 2, kind: input, shape index: {}]   ;;  %s1479_s3 = inlined_call_operand.hbm [shape: f32[64,128], index: 3, kind: input, shape index: {}]   ;;  %s1480_s4 = inlined_call_operand.hbm [shape: f32[53,64], index: 4, kind: input, shape index: {}]   ;;  %s1481_s5 = inlined_call_operand.hbm [shape: f32[2,32,128], index: 5, kind: output, shape index: {}]   ;;  %s1482_s1 = inlined_call_operand.vmem [shape: s32[4], index: 1, kind: input, shape index: {}]  }
   0x1   :  { %s851_s20 = scalar_lea.hbm %s1477_s0, 16 }
   0x2   :  { %p852_p0 = scmp.ne.s32.totalorder %s1477_s0, %s851_s20  ;;  %p855_p1 = scmp.lt.u32.totalorder %s851_s20, %s1477_s0 }
   0x4   :  { %p857_p2 = pnand %p855_p1, %p852_p0 }
   0x6   :  { %860 = shalt.err (!%p857_p2)  }
   0x7   :  { %s1096_s25 = smov [#allocation5]   ;;  %s12_s30 = sshll.u32 %s1482_s1, 4  ;;  %s13_s30 = int_to_ptr.vmem [resolvable:$true] %s12_s30 }
   0x8   :  { %11 = dma.hbm_to_smem %s1477_s0, 16, %s1096_s25, [#allocation4] }
   0x9   :  { %s861_s6 = scalar_lea.vmem %s13_s30, 16  ;;  %p866_p4 = scmp.lt.s32.totalorder %s13_s30, %s13_s30 }
   0xa   :  { %p862_p3 = scmp.ne.s32.totalorder %s13_s30, %s861_s6  ;;  %p867_p5 = scmp.lt.s32.totalorder %s861_s6, %s861_s6 }
   0xc   :  { %p868_p6 = por %p867_p5, %p866_p4 }
   0xe   :  { %p869_p7 = pnand %p868_p6, %p862_p3 }
  0x10   :  { %872 = shalt.err (!%p869_p7)  }
  0x11   :  { %s1097_s7 = smov [#allocation6]  }
  0x12   :  { %15 = dma.vmem_to_smem %s13_s30, 16, %s1097_s7, [#allocation4] }
  0x13   :  { %1046 = dma.done.wait [#allocation4], 32 }
  0x14   :  { %1047 = vsyncadd [#allocation4], 4294967264 }
  0x15   :  { %17 = sfence }
  0x16   :  { %18 = vsyncpa [#allocation8], 0 }
  0x17   :  { %19 = vsyncpa [#allocation11], 0 }
  0x18   :  { %20 = vsyncpa [#allocation9], 0 }
  0x19   :  { %22 = vsyncpa [#allocation9 + $0x1], 0  ;;  %s1158_s0 = smov 0   ;;  %s1160_s1 = smov 0  }
  0x1a   :  { %s1162_s8 = smov 0   ;;  %s1164_s9 = smov 0  }
  0x1b   :  { %s1166_s10 = smov 0   ;;  %s1168_s11 = smov 0  }
  0x1c   :  { %s1170_s12 = smov 0   ;;  %s1172_s13 = smov 0  }
  0x1d LB: > { %s626_s14 = sadd.s32 4294967295, %s1094_s13   ;;  %s627_s15 = sadd.s32 4294967294, %s1094_s13   ;;  %s1094_s13 = sphi %s1172_s13, %s28_s13   ;;  %s1090_s12 = sphi %s1170_s12, %s1509_s12   ;;  %s1086_s11 = sphi %s1168_s11, %s1508_s11   ;;  %s1082_s10 = sphi %s1166_s10, %s1507_s10   ;;  %s1078_s9 = sphi %s1164_s9, %s1506_s9   ;;  %s1074_s8 = sphi %s1162_s8, %s1505_s8   ;;  %s1070_s1 = sphi %s1160_s1, %s1504_s1   ;;  %s1066_s0 = sphi %s1158_s0, %s1503_s0  }
  0x1e   : > { %s37_s16 = sadd.s32 1, %s1086_s11  ;;  %s40_s17 = sadd.s32 1, %s1090_s12 }
  0x1f   : > { %p38_p8 = scmp.ge.s32.totalorder %s37_s16, 2  ;;  %s91_s18 = sadd.s32 1, %s1074_s8 }
  0x20   : > { %p101_p9 = scmp.ne.s32.totalorder %s1074_s8, %s1070_s1  ;;  %p102_p10 = scmp.eq.s32.totalorder %s626_s14, 3 }
  0x21   : > { %s1511_s16 = smov (%p38_p8, %s37_s16), 0  ;;  %s1513_s17 = smov (!%p38_p8, %s40_s17), %s1090_s12 }
  0x22   : > { %s87_s19 = ssub.s32 %s1086_s11, %s1511_s16  ;;  %p1210_p11 = por %p102_p10, %p101_p9 }
  0x23   : > { %p42_p12 = scmp.ge.s32.totalorder %s1513_s17, 2  ;;  %p107_p13 = scmp.ne.s32.totalorder %s1070_s1, %s1066_s0 }
  0x24   : > { %s1489_s20 = scalar_select %p1210_p11, 1, 0 }
  0x25   : > { %p108_p0 = scmp.eq.s32.totalorder %s627_s15, 3  ;;  %p628_p1 = scmp.ge.s32.totalorder %s1094_s13, 1 }
  0x26   : > { %s1515_s17 = smov (%p42_p12, %s1513_s17), 0  ;;  %p115_p3 = scmp.lt.s32.totalorder %s1094_s13, 5 }
  0x27   : > { %p1219_p2 = por %p108_p0, %p107_p13  ;;  %s86_s22 = ssub.s32 %s1090_s12, %s1515_s17 }
  0x28   : > { %s88_s23 = sor.u32 %s87_s19, %s86_s22  ;;  %p1226_p4 = pnand %p628_p1, %p115_p3 }
  0x29   : > { %s1490_s21 = scalar_select %p1219_p2, 1, 0 }
  0x2a   : > { %s1491_s24 = scalar_select %p1226_p4, 1, 0 }
  0x2b   : > { %p89_p5 = scmp.eq.s32.totalorder %s88_s23, 0  ;;  %p1230_p6 = scmp.eq.s32.totalorder %s626_s14, 0 }
  0x2c   : > { %p749_p7 = pneg %p1226_p4  ;;  %s1098_s27 = smov [#allocation7]  }
  0x2d   : > { %s1492_s25 = scalar_select %p1230_p6, 1, 0 }
  0x2e   : > { %s1237_s26 = scalar_select %p89_p5, %s1074_s8, %s91_s18  }
  0x2f   : > { %s128_s28 = sshll.u32 %s1098_s27, 4  ;;  %p1241_p8 = pnand %p1230_p6, %p749_p7  ;;  %s129_s28 = int_to_ptr.vmem [resolvable:$true] %s128_s28 }
  0x30   : > { %s1099_s30 = smov [#allocation10]   ;;  %s873_s15 = scalar_lea.hbm %s1478_s2, 128 }
  0x31   : > { %s138_s6 = sshll.u32 %s1099_s30, 4  ;;  %p874_p9 = scmp.ne.s32.totalorder %s1478_s2, %s873_s15  ;;  %s139_s6 = int_to_ptr.vmem [resolvable:$true] %s138_s6 }
  0x32   : > { %p875_p10 = pneg %p1241_p8  ;;  %p880_p0 = scmp.lt.u32.totalorder %s873_s15, %s1478_s2 }
  0x34   : > { %p876_p12 = pnand %p875_p10, %p874_p9 }
  0x36   : > { %p877_p13 = pneg %p876_p12 }
  0x38   : > { %p882_p1 = pnand %p880_p0, %p877_p13 }
  0x3a   : > { %885 = shalt.err (!%p882_p1)
}
  0x3b   : > { %s886_s27 = scalar_lea.vmem %s129_s28, 128  ;;  %p894_p2 = scmp.lt.s32.totalorder %s129_s28, %s129_s28 }
  0x3c   : > { %p887_p3 = scmp.ne.s32.totalorder %s129_s28, %s886_s27  ;;  %p895_p11 = scmp.lt.s32.totalorder %s886_s27, %s886_s27 }
  0x3e   : > { %p889_p5 = pnand %p887_p3, %p875_p10  ;;  %p896_p6 = por %p895_p11, %p894_p2 }
  0x40   : > { %p890_p7 = pneg %p889_p5 }
  0x42   : > { %p897_p4 = pnand %p896_p6, %p890_p7 }
  0x44   : > { %900 = shalt.err (!%p897_p4)
}
  0x45   : > { %752 = dma.hbm_to_vmem [thread:$0]  (!%p1241_p8), %s1478_s2, 128, %s129_s28, [#allocation8]  }
  0x46   : > { %s901_s19 = scalar_lea.hbm %s1479_s3, 1024 }
  0x47   : > { %p902_p9 = scmp.ne.s32.totalorder %s1479_s3, %s901_s19  ;;  %p908_p4 = scmp.lt.u32.totalorder %s901_s19, %s1479_s3 }
  0x49   : > { %p904_p11 = pnand %p902_p9, %p875_p10 }
  0x4b   : > { %p905_p2 = pneg %p904_p11 }
  0x4d   : > { %p910_p6 = pnand %p908_p4, %p905_p2 }
  0x4f   : > { %913 = shalt.err (!%p910_p6)
}
  0x50   : > { %s914_s28 = scalar_lea.vmem %s139_s6, 1024  ;;  %p922_p1 = scmp.lt.s32.totalorder %s139_s6, %s139_s6 }
  0x51   : > { %p915_p12 = scmp.ne.s32.totalorder %s139_s6, %s914_s28  ;;  %p923_p3 = scmp.lt.s32.totalorder %s914_s28, %s914_s28 }
  0x53   : > { %p917_p13 = pnand %p915_p12, %p875_p10  ;;  %p924_p5 = por %p923_p3, %p922_p1 }
  0x55   : > { %p918_p0 = pneg %p917_p13 }
  0x57   : > { %p925_p7 = pnand %p924_p5, %p918_p0 }
  0x59   : > { %928 = shalt.err (!%p925_p7)
}
  0x5a   : > { %s1100_s30 = smov 128   ;;  %s1101_s7 = smov 8  }
  0x5b   : > { %755 = dma.hbm_to_vmem [thread:$0]  (!%p1241_p8), %s1479_s3, 1024, %s139_s6, [#allocation11], %s1100_s30, %s1100_s30, %s1101_s7  }
  0x5c   : > { %p1494_p9 = scmp.ne.s32.totalorder %s1491_s24, 0 }
  0x5d   : > { %p1495_p11 = scmp.ne.s32.totalorder (!%p1494_p9), %s1492_s25, 0 }
  0x5e   : > { %154 = sbr.rel (%p1494_p9) target bundleno = 1031 (0x407), region = 28 }
  0x65   : > { %1049 = dma.done.wait (%p1495_p11), [#allocation8], 128  }
  0x66   : > { %1051 = vsyncadd (%p1495_p11), [#allocation8], 4294967168 }
  0x67   : > { %1053 = dma.done.wait (%p1495_p11), [#allocation11], 1024  }
  0x68   : > { %1055 = vsyncadd (%p1495_p11), [#allocation11], 4294966272  ;;  %s1487_s29 = sand.u32 1, %s1070_s1   ;;  %s635_s6 = sshll.u32 %s1082_s10, 1  ;;  %v223_v0 = vlaneseq  ;;  %v1308_v2 = vld [vmem:[#allocation7] sm:$0x1] }
  0x69   : > { %s1301_s24 = sshll.u32 %s1487_s29, 4  ;;  %s177_s19 = sadd.s32 %s1078_s9, %s635_s6  ;;  %v1310_v3 = vld [vmem:[#allocation7 + $0x1] sm:$0x1]  ;;  %v1312_v4 = vld [vmem:[#allocation7 + $0x2] ss:$0 sm:$0xff] }
  0x6a   : > { %s178_s22 = sld [smem:[#allocation5 + %s177_s19]]  ;;  %v1304_v1 = vshrl.u32 %v223_v0, 7  ;;  %s1102_s25 = smov [#allocation2]   ;;  %v1318_v5 = vld [vmem:[#allocation7 + $0x3] sm:$0x1] }
  0x6b   : > { %s1306_s18 = sld [smem:[#allocation6 + %s177_s19]]  ;;  %s197_s23 = sshll.u32 %s1102_s25, 4  ;;  %s1314_s23 = int_to_ptr.vmem [resolvable:$true] %s197_s23 }
  0x6c   : > { %s1103_s27 = smov [#allocation2 + $0x8]  }
  0x6d   : > { %s217_s28 = sshll.u32 %s1103_s27, 4  ;;  %s1316_s28 = int_to_ptr.vmem [resolvable:$true] %s217_s28 }
  0x70   : > { %s637_s30 = sshll.u32 %s178_s22, 4  ;;  %s933_s22 = scalar_lea.hbm %s1480_s4, 896 }
  0x71   : > { %p1488_p2 = scmp.gt.s32.totalorder %s1306_s18, 0  ;;  %s189_s15 = scalar_lea.hbm %s1480_s4, %s637_s30 }
  0x72   : > { %s1327_s6 = scalar_lea.hbm %s189_s15, 128  ;;  %p934_p0 = scmp.lt.u32.totalorder %s189_s15, %s1480_s4 }
  0x73   : > { %p930_p6 = scmp.ne.s32.totalorder %s189_s15, %s1327_s6  ;;  %p935_p1 = scmp.lt.u32.totalorder %s933_s22, %s1327_s6 }
  0x74   : > { %p937_p5 = scmp.lt.u32.totalorder %s1327_s6, %s189_s15 }
  0x75   : > { %p931_p12 = pnand %p930_p6, %p1488_p2  ;;  %p936_p3 = por %p935_p1, %p934_p0 }
  0x77   : > { %p932_p13 = pneg %p931_p12  ;;  %p938_p7 = por %p937_p5, %p936_p3 }
  0x79   : > { %p939_p9 = pnand %p938_p7, %p932_p13 }
  0x7b   : > { %942 = shalt.err (!%p939_p9)  }
  0x7c   : > { %s943_s30 = scalar_lea.vmem %s1314_s23, 128  ;;  %s949_s7 = scalar_lea.vmem %s1314_s23, 256 }
  0x7d   : > { %p944_p11 = scmp.ne.s32.totalorder %s1314_s23, %s943_s30  ;;  %p950_p4 = scmp.lt.s32.totalorder %s1314_s23, %s1314_s23 }
  0x7e   : > { %p951_p10 = scmp.lt.s32.totalorder %s949_s7, %s943_s30 }
  0x7f   : > { %p945_p6 = pnand %p944_p11, %p1488_p2 }
  0x80   : > { %p952_p8 = por %p951_p10, %p950_p4 }
  0x81   : > { %p946_p12 = pneg %p945_p6 }
  0x83   : > { %p953_p0 = pnand %p952_p8, %p946_p12 }
  0x85   : > { %956 = shalt.err (!%p953_p0)  }
  0x86   : > { %744 = dma.hbm_to_vmem [thread:$0]  (%p1488_p2), %s189_s15, 128, %s1314_s23, [#allocation3] }
  0x87   : > { %p765_p13 = scmp.gt.s32.totalorder %s1306_s18, 8  ;;  %p1496_p1 = scmp.eq.s32.totalorder %s1078_s9, 0 }
  0x88   : > { %s985_s14 = scalar_lea.hbm %s189_s15, 256  ;;  %p962_p4 = scmp.lt.u32.totalorder %s1327_s6, %s1480_s4 }
  0x89   : > { %s1353_s29 = scalar_select %p1496_p1, 1, 0 }
  0x8a   : > { %p958_p3 = scmp.ne.s32.totalorder %s1327_s6, %s985_s14  ;;  %p963_p5 = scmp.lt.u32.totalorder %s933_s22, %s985_s14 }
  0x8b   : > { %p965_p9 = scmp.lt.u32.totalorder %s985_s14, %s1327_s6 }
  0x8c   : > { %p959_p10 = pnand %p958_p3, %p765_p13  ;;  %p964_p7 = por %p963_p5, %p962_p4 }
  0x8e   : > { %p960_p8 = pneg %p959_p10  ;;  %p966_p11 = por %p965_p9, %p964_p7 }
  0x90   : > { %p967_p6 = pnand %p966_p11, %p960_p8 }
  0x92   : > { %970 = shalt.err (!%p967_p6)  }
  0x93   : > { %s971_s15 = scalar_lea.vmem %s1316_s28, 128  ;;  %p978_p3 = scmp.lt.s32.totalorder %s1316_s28, %s1314_s23 }
  0x94   : > { %p972_p12 = scmp.ne.s32.totalorder %s1316_s28, %s971_s15  ;;  %p979_p10 = scmp.lt.s32.totalorder %s949_s7, %s971_s15 }
  0x96   : > { %p973_p0 = pnand %p972_p12, %p765_p13  ;;  %p980_p2 = por %p979_p10, %p978_p3 }
  0x98   : > { %p974_p1 = pneg %p973_p0 }
  0x9a   : > { %p981_p4 = pnand %p980_p2, %p974_p1 }
  0x9c   : > { %984 = shalt.err (!%p981_p4)  }
  0x9d   : > { %746 = dma.hbm_to_vmem [thread:$0]  (%p765_p13), %s1327_s6, 128, %s1316_s28, [#allocation3 + $0x1] }
  0x9e   : > { %s1374_s22 = scalar_lea.vmem [#allocation12], %s1301_s24  ;;  %p1497_p8 = scmp.le.s32.totalorder %s1306_s18, 0 }
  0xa0   : > { %231 = sbr.rel (%p1497_p8) target bundleno = 573 (0x23d), region = 56 }
  0xa7   : > { %1056 = dma.done.wait [#allocation3], 128 }
  0xa8   : > { %1057 = vsyncadd [#allocation3], 4294967168  ;;  %v1104_v6 = vmov 0.0|0.0   ;;  %vm1105_vm0 = vmmov 0   ;;  %v1106_v7 = vmov 0.0   ;;  %v236_v8 = vld [vmem:[#allocation10] sm:$0xff]  ;;  %v342_v34 = vstv %s1353_s29 }
  0xa9   : > { %711 = vmatprep.subr.bf16.mxu0 %v1104_v6  ;;  %689 = vmatprep.mubr.msk.f32.mxu0 %vm1105_vm0, %v1106_v7  ;;  %v237_v9 = vld [vmem:[#allocation10 + $0x8] sm:$0xff]  ;;  %v238_v10 = vld [vmem:[#allocation10 + $0x10] sm:$0xff]  ;;  %v239_v12 = vld [vmem:[#allocation10 + $0x18] sm:$0xff]  ;;  %vm248_vm1 = vcmask 523264   ;;  %v246_v21 = vsub.s32 0, %v1304_v1  ;;  %v344_v35 = vstv %s1306_s18  ;;  %vm343_vm2 = vcmp.ge.s32.totalorder %v1304_v1, %v342_v34 }
  0xaa   : > { %v712_v11 = vpack.c.bf16 %v237_v9, %v236_v8  ;;  %v715_v13 = vpack.c.bf16 %v239_v12, %v238_v10  ;;  %v240_v14 = vld [vmem:[#allocation10 + $0x20] sm:$0xff]  ;;  %v241_v15 = vld [vmem:[#allocation10 + $0x28] sm:$0xff]  ;;  %v242_v17 = vld [vmem:[#allocation10 + $0x30] sm:$0xff]  ;;  %vm345_vm3 = vcmp.lt.s32.totalorder %v1304_v1, %v344_v35  ;;  %vm350_vm4 = vcmp.lt.s32.totalorder %v1304_v1, 1 }
  0xab   : > { %v718_v16 = vpack.c.bf16 %v241_v15, %v240_v14  ;;  %v243_v18 = vld [vmem:[#allocation10 + $0x38] sm:$0xff]  ;;  %v235_v20 = vld [vmem:[#allocation2] sm:$0xff]  ;;  %v247_v22 = vrot.slane %v1308_v2, %v246_v21  ;;  %v339_v36 = vrot.slane %v1310_v3, %v246_v21  ;;  %vm351_vm5 = vcmp.eq.s32.totalorder %v342_v34, 1  ;;  %vm346_vm6 = vmand %vm343_vm2, %vm345_vm3 }
  0xac   : > { %713 = vmatpush3.bf16.msra.mxu0 %v712_v11  ;;  %v721_v19 = vpack.c.bf16 %v243_v18, %v242_v17  ;;  %v358_v41 = vrot.slane %v1318_v5, %v246_v21  ;;  %vm352_vm7 = vmand %vm350_vm4, %vm351_vm5 }
  0xad   : > { %714 = vmatprep.subr.bf16.mxu0 %v1104_v6 }
  0xb0   : > { %716 = vmatpush3.bf16.msra.mxu0 %v715_v13 }
  0xb1   : > { %717 = vmatprep.subr.bf16.mxu0 %v1104_v6 }
  0xb4   : > { %719 = vmatpush3.bf16.msra.mxu0 %v718_v16 }
  0xb5   : > { %720 = vmatprep.subr.bf16.mxu0 %v1104_v6 }
  0xb8   : > { %722 = vmatpush3.bf16.msra.mxu0 %v721_v19 }
  0xbb   : > { %690 = vmatmul.mubr.msk.f32.vlgmr.msra.gmra.mrb[0].mxu0 %vm248_vm1, %v235_v20 }
 0x18e   : > { %v318_v23 = vpop.f32.mrb[0].mxu0 }
 0x18f   : > { %v319_v24 = vadd.f32 %v318_v23, %v247_v22  ;;  %v691_v25 = vpop.f32.mrb[1].mxu0 }
 0x191   : > { %322 = vadd.xlane.f32.xlu0 %v319_v24  ;;  %v326_v26 = vmul.f32 %v319_v24, %v319_v24 }
 0x195   : > { %327 = vadd.xlane.f32.xlu0 %v326_v26 }
 0x21e   : > { %v323_v27 = vpop.xlane.xlu0 %322 }
 0x21f   : > { %v325_v28 = vmul.f32 0.0078125, %v323_v27 }
 0x221   : > { %v330_v30 = vmul.f32 %v325_v28, %v325_v28  ;;  %v334_v37 = vsub.f32 %v319_v24, %v325_v28 }
 0x222   : > { %v328_v29 = vpop.xlane.xlu0 %327 }
 0x223   : > { %v329_v31 = vmul.f32 0.0078125, %v328_v29 }
 0x225   : > { %v331_v32 = vsub.f32 %v329_v31, %v330_v30 }
 0x227   : > { %v332_v33 = vadd.f32 1e-05, %v331_v32 }
 0x229   : > { %847 = vrsqrt.f32 %v332_v33 }
 0x233   : > { %v848_v38 = vpop.eup %847 }
 0x234   : > { %v335_v39 = vmul.f32 %v848_v38, %v334_v37 }
 0x236   : > { %v340_v40 = vmul.f32 %v339_v36, %v335_v39 }
 0x238   : > { %v341_v42 = vadd.f32 %v1312_v4, %v340_v40 }
 0x23a   : > { %v349_v43 = vsel %vm346_vm6, %v341_v42, %v1312_v4 }
 0x23b   : > { %v359_v44 = vsel %vm352_vm7, %v358_v41, %v349_v43 }
 0x23c   : > { %360 = vst [vmem:[%s1374_s22] sm:$0xff] %v359_v44 }
 0x23d PF: > { %p1498_p2 = scmp.gt.s32.totalorder %s1306_s18, 0 }
 0x23e   : > { %vm365_vm8 = vcmp.lt.s32.totalorder (!%p1498_p2), %v1304_v1, 1  ;;  %v366_v45 = vstv (!%p1498_p2), %s1353_s29  ;;  %v373_v46 = vsub.s32 (!%p1498_p2), 0, %v1304_v1 }
 0x23f   : > { %364 = sbr.rel (%p1498_p2) target bundleno = 582 (0x246), region = 60  ;;  %vm367_vm9 = vcmp.eq.s32.totalorder (!%p1498_p2), %v366_v45, 1 }
 0x240   : > { %vm368_vm10 = vmand (!%p1498_p2), %vm365_vm8, %vm367_vm9  ;;  %v374_v47 = vrot.slane (!%p1498_p2), %v1318_v5, %v373_v46 }
 0x242   : > { %v375_v48 = vsel (!%p1498_p2), %vm368_vm10, %v374_v47, %v1312_v4 }
 0x243   : > { %376 = vst [vmem:[%s1374_s22] sm:$0xff] (!%p1498_p2), %v375_v48 }
 0x246 PF: > { %v377_v49 = vadd.s32 8, %v1304_v1  ;;  %p1499_p5 = scmp.le.s32.totalorder %s1306_s18, 8 }
 0x248   : > { %380 = sbr.rel (%p1499_p5) target bundleno = 996 (0x3e4), region = 64 }
 0x24f   : > { %1058 = dma.done.wait [#allocation3 + $0x1], 128 }
 0x250   : > { %1059 = vsyncadd [#allocation3 + $0x1], 4294967168  ;;  %v1107_v50 = vmov 0.0|0.0   ;;  %vm1108_vm11 = vmmov 0   ;;  %v1109_v51 = vmov 0.0   ;;  %v386_v52 = vld [vmem:[#allocation10] sm:$0xff]  ;;  %v494_v18 = vstv %s1306_s18 }
 0x251   : > { %723 = vmatprep.subr.bf16.mxu0 %v1107_v50  ;;  %708 = vmatprep.mubr.msk.f32.mxu0 %vm1108_vm11, %v1109_v51  ;;  %v387_v53 = vld [vmem:[#allocation10 + $0x8] sm:$0xff]  ;;  %v388_v54 = vld [vmem:[#allocation10 + $0x10] sm:$0xff]  ;;  %v389_v56 = vld [vmem:[#allocation10 + $0x18] sm:$0xff]  ;;  %vm398_vm12 = vcmask 523264   ;;  %v396_v5 = vsub.s32 0, %v1304_v1  ;;  %v492_v1 = vstv %s1353_s29  ;;  %vm495_vm14 = vcmp.lt.s32.totalorder %v377_v49, %v494_v18 }
 0x252   : > { %v724_v55 = vpack.c.bf16 %v387_v53, %v386_v52  ;;  %v727_v57 = vpack.c.bf16 %v389_v56, %v388_v54  ;;  %v390_v58 = vld [vmem:[#allocation10 + $0x20] sm:$0xff]  ;;  %v391_v59 = vld [vmem:[#allocation10 + $0x28] sm:$0xff]  ;;  %v392_v61 = vld [vmem:[#allocation10 + $0x30] sm:$0xff]  ;;  %vm493_vm13 = vcmp.ge.s32.totalorder %v377_v49, %v492_v1 }
 0x253   : > { %v730_v60 = vpack.c.bf16 %v391_v59, %v390_v58  ;;  %v393_v62 = vld [vmem:[#allocation10 + $0x38] sm:$0xff]  ;;  %v385_v0 = vld [vmem:[#allocation2 + $0x8] sm:$0xff]  ;;  %v397_v6 = vrot.slane %v1308_v2, %v396_v5  ;;  %v489_v2 = vrot.slane %v1310_v3, %v396_v5  ;;  %vm496_vm15 = vmand %vm493_vm13, %vm495_vm14 }
 0x254   : > { %725 = vmatpush3.bf16.msra.mxu0 %v724_v55  ;;  %v733_v63 = vpack.c.bf16 %v393_v62, %v392_v61 }
 0x255   : > { %726 = vmatprep.subr.bf16.mxu0 %v1107_v50 }
 0x258   : > { %728 = vmatpush3.bf16.msra.mxu0 %v727_v57 }
 0x259   : > { %729 = vmatprep.subr.bf16.mxu0 %v1107_v50 }
 0x25c   : > { %731 = vmatpush3.bf16.msra.mxu0 %v730_v60 }
 0x25d   : > { %732 = vmatprep.subr.bf16.mxu0 %v1107_v50 }
 0x260   : > { %734 = vmatpush3.bf16.msra.mxu0 %v733_v63 }
 0x263   : > { %709 = vmatmul.mubr.msk.f32.vlgmr.msra.gmra.mrb[0].mxu0 %vm398_vm12, %v385_v0 }
 0x336   : > { %v468_v7 = vpop.f32.mrb[0].mxu0 }
 0x337   : > { %v469_v8 = vadd.f32 %v468_v7, %v397_v6  ;;  %v710_v9 = vpop.f32.mrb[1].mxu0 }
 0x339   : > { %472 = vadd.xlane.f32.xlu0 %v469_v8  ;;  %v476_v10 = vmul.f32 %v469_v8, %v469_v8 }
 0x33d   : > { %477 = vadd.xlane.f32.xlu0 %v476_v10 }
 0x3c6   : > { %v473_v11 = vpop.xlane.xlu0 %472 }
 0x3c7   : > { %v475_v12 = vmul.f32 0.0078125, %v473_v11 }
 0x3c9   : > { %v480_v14 = vmul.f32 %v475_v12, %v475_v12  ;;  %v484_v19 = vsub.f32 %v469_v8, %v475_v12 }
 0x3ca   : > { %v478_v13 = vpop.xlane.xlu0 %477 }
 0x3cb   : > { %v479_v15 = vmul.f32 0.0078125, %v478_v13 }
 0x3cd   : > { %v481_v16 = vsub.f32 %v479_v15, %v480_v14 }
 0x3cf   : > { %v482_v17 = vadd.f32 1e-05, %v481_v16 }
 0x3d1   : > { %849 = vrsqrt.f32 %v482_v17 }
 0x3db   : > { %v850_v20 = vpop.eup %849 }
 0x3dc   : > { %v485_v21 = vmul.f32 %v850_v20, %v484_v19 }
 0x3de   : > { %v490_v22 = vmul.f32 %v489_v2, %v485_v21 }
 0x3e0   : > { %v491_v23 = vadd.f32 %v1312_v4, %v490_v22 }
 0x3e2   : > { %v499_v24 = vsel %vm496_vm15, %v491_v23, %v1312_v4 }
 0x3e3   : > { %500 = vst [vmem:[%s1374_s22 + $0x8] sm:$0xff] %v499_v24 }
 0x3e4 PF: > { %504 = sbr.rel (%p765_p13) target bundleno = 1003 (0x3eb), region = 68  ;;  %505 = vst [vmem:[%s1374_s22 + $0x8] sm:$0xff] (!%p765_p13), %v1312_v4 }
 0x3eb PF: > { %s648_s24 = sshll.u32 %s1078_s9, 1  ;;  %s649_s23 = sshll.u32 %s1082_s10, 2 }
 0x3ec   : > { %s522_s28 = sshll.u32 %s1374_s22, 4  ;;  %s519_s6 = sadd.s32 %s649_s23, %s648_s24  ;;  %s1416_s28 = int_to_ptr.vmem [resolvable:$true] %s522_s28 }
 0x3ed   : > { %s650_s18 = sshll.u32 %s519_s6, 7  ;;  %s1500_s29 = sand.u32 1, %s1070_s1  }
 0x3ee   : > { %s1421_s7 = scalar_lea.hbm %s1481_s5, %s650_s18  ;;  %s1425_s14 = scalar_lea.sflag [#allocation9], %s1500_s29 }
 0x3ef   : > { %s986_s19 = scalar_lea.vmem %s1416_s28, 256  ;;  %p1501_p7 = scmp.ne.s32.totalorder %s1489_s20, 0 }
 0x3f0   : > { %p987_p13 = scmp.ne.s32.totalorder %s1416_s28, %s986_s19  ;;  %s1110_s9 = smov [#allocation12]  }
 0x3f1   : > { %s990_s10 = sshll.u32 %s1110_s9, 4  ;;  %s991_s10 = int_to_ptr.vmem [resolvable:$false] %s990_s10 }
 0x3f2   : > { %p988_p9 = pnand %p987_p13, %p1501_p7  ;;  %s992_s25 = scalar_lea.vmem %s991_s10, 512 }
 0x3f3   : > { %p993_p6 = scmp.lt.s32.totalorder %s1416_s28, %s991_s10  ;;  %p994_p12 = scmp.lt.s32.totalorder %s992_s25, %s986_s19 }
 0x3f4   : > { %p989_p11 = pneg %p988_p9 }
 0x3f5   : > { %p995_p0 = por %p994_p12, %p993_p6 }
 0x3f7   : > { %p996_p1 = pnand %p995_p0, %p989_p11 }
 0x3f9   : > { %999 = shalt.err (!%p996_p1)
}
 0x3fa   : > { %s1000_s15 = scalar_lea.hbm %s1421_s7, 256  ;;  %s1004_s23 = scalar_lea.hbm %s1481_s5, 1024 }
 0x3fb   : > { %p1001_p3 = scmp.ne.s32.totalorder %s1421_s7, %s1000_s15  ;;  %p1005_p8 = scmp.lt.u32.totalorder %s1421_s7, %s1481_s5 }
 0x3fc   : > { %p1006_p2 = scmp.lt.u32.totalorder %s1004_s23, %s1000_s15  ;;  %p1008_p13 = scmp.lt.u32.totalorder %s1000_s15, %s1421_s7 }
 0x3fd   : > { %p1002_p10 = pnand %p1001_p3, %p1501_p7 }
 0x3fe   : > { %p1007_p5 = por %p1006_p2, %p1005_p8 }
 0x3ff   : > { %p1003_p4 = pneg %p1002_p10 }
 0x400   : > { %p1009_p9 = por %p1008_p13, %p1007_p5 }
 0x402   : > { %p1010_p11 = pnand %p1009_p9, %p1003_p4 }
 0x404   : > { %1013 = shalt.err (!%p1010_p11)
}
 0x405   : > { %s1111_s27 = smov 128   ;;  %s1112_s30 = smov 8  }
 0x406   : > { %747 = dma.vmem_to_hbm [thread:$0]  (%p1501_p7), %s1416_s28, 256, %s1421_s7, %s1425_s14, %s1111_s27, %s1111_s27, %s1112_s30  }
 0x407 PF: > { %p766_p6 = scmp.ge.s32.totalorder %s1094_s13, 2  ;;  %s537_s29 = sand.u32 1, %s1066_s0  }
 0x408   : > { %p1502_p12 = scmp.ne.s32.totalorder %s1490_s21, 0  ;;  %s538_s19 = scalar_lea.sflag [#allocation9], %s537_s29 }
 0x40a   : > { %p757_p0 = pnand %p766_p6, %p1502_p12 }
 0x40c   : > { %1061 = dma.done.wait (!%p757_p0), %s538_s19, 256  }
 0x40d   : > { %1063 = vsyncadd (!%p757_p0), %s538_s19, 4294967040  ;;  %s28_s13 = sadd.s32 1, %s1094_s13   ;;  %s1503_s0 = smov %s1070_s1 }
 0x40e   : > { %p25_p1 = scmp.ge.s32.totalorder %s28_s13, 6   ;;  %s1504_s1 = smov %s1074_s8 }
 0x40f   : > { %s1505_s8 = smov %s1237_s26  ;;  %s1506_s9 = smov %s1086_s11 }
 0x410   : > { %s1507_s10 = smov %s1090_s12  ;;  %s1508_s11 = smov %s1511_s16 }
 0x411   : > { %s1509_s12 = smov %s1515_s17  ;;  %27 = sbr.rel (!%p25_p1) target bundleno = 29 (0x1d), region = 107 }
 0x418   :  { %543 = vsyncpa [#allocation8], 1 }
 0x419   :  { %545 = vsyncpa [#allocation8 + $0x1], 1 }
 0x41a   :  { %546 = vsyncpa [#allocation11], 1 }
 0x41b   :  { %547 = vsyncpa [#allocation9], 1 }
 0x41c   :  { %549 = vsyncpa [#allocation9 + $0x1], 1 }
 0x41d   :  { %550 = vsyncmov [#allocation3] }
 0x420   :  { %s551_s20 = vpop.sfrf %550 }
 0x421   :  { %p653_p7 = scmp.ne.s32.totalorder %s551_s20, 0 }
 0x423   :  { %555 = shalt.err (%p653_p7)  }
 0x424   :  { %557 = vsyncmov [#allocation3 + $0x1] }
 0x427   :  { %s558_s21 = vpop.sfrf %557 }
 0x428   :  { %p654_p3 = scmp.ne.s32.totalorder %s558_s21, 0 }
 0x42a   :  { %562 = shalt.err (%p654_p3)  }

</bundles_post_ra>
